<compile_context>
chip_gen: v5e
topology: v5e:2x2
jax: 0.10.0
libtpu: 0.0.40
codegen_flags: <defaults>
</compile_context>

<pallas_src>
import functools

import jax
import jax.numpy as jnp
from jax import lax
from jax.experimental import pallas as pl
from jax.experimental.pallas import tpu as pltpu


def _round_up(x, m):
    return (x + m - 1) // m * m


def _contrastive_pair_kernel(i_tab_ref, j_tab_ref,      # scalar-prefetch (SMEM): tile-pair table
                             x_row_ref, x_col_ref,      # pre-normalized bf16 tiles (T, Dp)
                             lab_i_ref, lab_j_ref,      # labels: (T, 1) column / (1, T) row
                             out_ref,                   # (8, 128) per-row-tile partials
                             *, margin, n_valid, tile, mask_padding):
    s = pl.program_id(0)
    i = i_tab_ref[s]            # row-tile index (non-decreasing over the grid)
    j = j_tab_ref[s]            # col-tile index (j >= i: upper-triangle tiles only)
    f32 = jnp.float32

    # ---- pairwise Euclidean distances: bf16 gram on the MXU, f32 accumulation ----
    gram = lax.dot_general(x_row_ref[...], x_col_ref[...],
                           (((1,), (1,)), ((), ())), preferred_element_type=f32)   # (T, T)
    dist = jnp.sqrt(jnp.maximum(2.0 - 2.0 * gram, 0.0))    # single clamp guards the sqrt

    # ---- pair masks from labels + global indices (small (T,1)/(1,T) broadcasts) ----
    same = lab_i_ref[...] == lab_j_ref[...]                                   # (T, T)
    row_g = lax.broadcasted_iota(jnp.int32, (tile, 1), 0) + i * tile          # global row ids
    col_g = lax.broadcasted_iota(jnp.int32, (1, tile), 1) + j * tile          # global col ids
    # strict upper triangle of the global pair matrix: drops the diagonal and, together with
    # the j >= i tile schedule, visits each unordered pair exactly once.
    keep = col_g > row_g
    if mask_padding:   # static flag: only emitted when the wrapper padded N
        keep = jnp.logical_and(keep,
                               jnp.logical_and(row_g < n_valid, col_g < n_valid))

    pos_mask = jnp.logical_and(same, keep)
    neg_mask = jnp.logical_and(jnp.logical_not(same), keep)

    # ---- per-pair losses: one fused mask/select per component ----
    pos_contrib = jnp.where(pos_mask, dist, 0.0)                              # relu(d - 0) = d
    neg_contrib = jnp.where(neg_mask, jnp.maximum(margin - dist, 0.0), 0.0)

    # ---- AvgNonZeroReducer partials: heavy lane reduce on the MXU (matvec vs ones), then a
    #      cheap (T,1) sublane fold on the XLU.  Counts via 0/1 bf16 masks + f32 acc -> exact.
    ones_f32 = jnp.ones((tile, 1), f32)
    ones_bf16 = jnp.ones((tile, 1), jnp.bfloat16)

    def lane_sum(mat_f32):
        return jnp.dot(mat_f32, ones_f32, preferred_element_type=f32)         # (T, 1)

    def lane_cnt(mat_f32):
        m = (mat_f32 > 0.0).astype(jnp.bfloat16)
        return jnp.dot(m, ones_bf16, preferred_element_type=f32)              # (T, 1), exact

    pos_sum = jnp.sum(lane_sum(pos_contrib), axis=0, keepdims=True)           # (1, 1)
    pos_cnt = jnp.sum(lane_cnt(pos_contrib), axis=0, keepdims=True)
    neg_sum = jnp.sum(lane_sum(neg_contrib), axis=0, keepdims=True)
    neg_cnt = jnp.sum(lane_cnt(neg_contrib), axis=0, keepdims=True)

    # Pack the 4 partials into the (8, 128) output tile: sublane r holds quantity r.
    srow = lax.broadcasted_iota(jnp.int32, (8, 128), 0)
    packed = (jnp.where(srow == 0, pos_sum, 0.0)
              + jnp.where(srow == 1, pos_cnt, 0.0)
              + jnp.where(srow == 2, neg_sum, 0.0)
              + jnp.where(srow == 3, neg_cnt, 0.0))

    # Pairs are ordered (i,i), (i,i+1), ..., (i,g-1) per row tile, so the output block for row
    # tile i stays resident across its whole sweep: init on the first pair (j == i), accumulate
    # on the later ones.
    @pl.when(i == j)
    def _():
        out_ref[...] = packed

    @pl.when(i != j)
    def _():
        out_ref[...] += packed


def contrastive_loss(embeddings, labels, *, embedding_size, margin, max_tile=512):
    # Wrapper: reshape, normalize once in f32, cast to bf16, zero-pad to lane-dense shapes.
    x = jnp.reshape(embeddings, (-1, embedding_size)).astype(jnp.float32)
    lab = jnp.reshape(labels, (-1,)).astype(jnp.int32)
    n = x.shape[0]

    # L2 normalization hoisted out of the kernel (was recomputed per grid step before).
    x_n = x * lax.rsqrt(jnp.maximum(jnp.sum(x * x, axis=-1, keepdims=True), 1e-24))
    x_bf = x_n.astype(jnp.bfloat16)

    d_pad = max(128, _round_up(embedding_size, 128))        # lane-dense embedding dim (keep 128)
    tile = min(max_tile, _round_up(n, 128))                  # tile is always a multiple of 128
    n_pad = _round_up(n, tile)
    g = n_pad // tile

    x_p = jnp.pad(x_bf, ((0, n_pad - n), (0, d_pad - embedding_size)))
    lab_p = jnp.pad(lab, (0, n_pad - n))
    lab_col = lab_p.reshape(n_pad, 1)
    lab_row = lab_p.reshape(1, n_pad)

    # Upper-triangle tile pairs (j >= i), row-major: each row tile's pairs are contiguous and
    # start at j == i (used as the accumulator init condition in the kernel).
    pairs = [(ii, jj) for ii in range(g) for jj in range(ii, g)]
    i_tab = jnp.asarray([p[0] for p in pairs], dtype=jnp.int32)
    j_tab = jnp.asarray([p[1] for p in pairs], dtype=jnp.int32)
    num_pairs = len(pairs)

    kernel = functools.partial(
        _contrastive_pair_kernel, margin=float(margin), n_valid=n, tile=tile,
        mask_padding=(n_pad != n))

    cost = pl.CostEstimate(
        flops=num_pairs * (2 * tile * tile * d_pad + 20 * tile * tile),
        transcendentals=num_pairs * tile * tile,
        bytes_accessed=num_pairs * (2 * tile * d_pad * 2 + 2 * tile * 4) + g * 8 * 128 * 4)

    # TODO(synk): if the full (n_pad, d_pad) bf16 slab fits the per-generation VMEM budget, a
    # constant-index_map resident column slab (sliced in-kernel with pl.ds) would remove the
    # per-step col-tile DMA; omitted since compute already hides that DMA.
    partials = pl.pallas_call(
        kernel,
        out_shape=jax.ShapeDtypeStruct((g * 8, 128), jnp.float32),
        grid_spec=pltpu.PrefetchScalarGridSpec(
            num_scalar_prefetch=2,
            grid=(num_pairs,),
            in_specs=[
                pl.BlockSpec((tile, d_pad), lambda s, it, jt: (it[s], 0)),  # row tile
                pl.BlockSpec((tile, d_pad), lambda s, it, jt: (jt[s], 0)),  # col tile
                pl.BlockSpec((tile, 1), lambda s, it, jt: (it[s], 0)),      # labels, column form
                pl.BlockSpec((1, tile), lambda s, it, jt: (0, jt[s])),      # labels, row form
            ],
            out_specs=pl.BlockSpec((8, 128), lambda s, it, jt: (it[s], 0)),  # per-row-tile partials
        ),
        compiler_params=pltpu.CompilerParams(
            dimension_semantics=("arbitrary",),
            vmem_limit_bytes=32 * 1024 * 1024),
        cost_estimate=cost,
    )(i_tab, j_tab, x_p, x_p, lab_col, lab_row)

    # Tiny final reduction: sum per-row-tile partials, apply AvgNonZeroReducer.  Only the upper
    # triangle was accumulated, which halves sums AND counts uniformly -> the means are unchanged.
    parts = partials.reshape(g, 8, 128)[:, :4, 0]           # (g, 4)
    tot = jnp.sum(parts, axis=0)                            # [pos_sum, pos_cnt, neg_sum, neg_cnt]
    pos_red = jnp.where(tot[1] > 0, tot[0] / jnp.maximum(tot[1], 1.0), 0.0)
    neg_red = jnp.where(tot[3] > 0, tot[2] / jnp.maximum(tot[3], 1.0), 0.0)
    return pos_red + neg_red


def _reference(embeddings, labels, embedding_size, margin):
    # Pure-JAX f32 reference of the same semantics (for sanity checking).
    x = jnp.reshape(embeddings, (-1, embedding_size)).astype(jnp.float32)
    lab = jnp.reshape(labels, (-1,))
    xn = x / jnp.maximum(jnp.linalg.norm(x, axis=-1, keepdims=True), 1e-12)
    dist = jnp.sqrt(jnp.maximum(2.0 - 2.0 * (xn @ xn.T), 0.0))
    same = lab[:, None] == lab[None, :]
    eye = jnp.eye(lab.shape[0], dtype=bool)
    pos_mask = same & ~eye
    neg_mask = ~same
    pos_val = dist
    neg_val = jnp.maximum(margin - dist, 0.0)

    def red(val, active):
        cnt = jnp.sum(active.astype(jnp.float32))
        s = jnp.sum(jnp.where(active, val, 0.0))
        return jnp.where(cnt > 0, s / jnp.maximum(cnt, 1.0), 0.0)

    return red(pos_val, pos_mask & (pos_val > 0)) + red(neg_val, neg_mask & (neg_val > 0))


if __name__ == "__main__":
    # config.MODEL.PARAMS.VECTOR_SIZE = 32, config.LOSS.PARAMS.MARGIN = 1.0
    EMBEDDING_SIZE = 32
    MARGIN = 1.0
    B, P = 2, 4  # flattened pool of N = 8 embeddings

    key = jax.random.PRNGKey(0)
    k_emb, k_lab = jax.random.split(key)
    embeddings = jax.random.normal(k_emb, (B, P, EMBEDDING_SIZE), dtype=jnp.float32)
    labels = jax.random.randint(k_lab, (B, P), 0, 3, dtype=jnp.int32)

    loss = contrastive_loss(embeddings, labels, embedding_size=EMBEDDING_SIZE, margin=MARGIN)
    loss = jax.block_until_ready(loss)

    ref = _reference(embeddings, labels, EMBEDDING_SIZE, MARGIN)
    # Kernel feeds pre-normalized bf16 embeddings to the MXU (f32 accumulation); tolerance covers
    # that ~1e-3 rounding difference against the pure-f32 reference.
    assert jnp.allclose(loss, ref, atol=1e-2, rtol=1e-2), (loss, ref)

    print("KERNEL_OK")
</pallas_src>

<mosaic_0001>
module attributes {stable_mosaic.version = 11 : i64} {
  func.func @_contrastive_pair_kernel(%arg0: i32, %arg1: memref<1xi32, #tpu.memory_space<smem>>, %arg2: memref<1xi32, #tpu.memory_space<smem>>, %arg3: memref<128x128xbf16, #tpu.memory_space<vmem>>, %arg4: memref<128x128xbf16, #tpu.memory_space<vmem>>, %arg5: memref<128x1xi32, #tpu.memory_space<vmem>>, %arg6: memref<1x128xi32, #tpu.memory_space<vmem>>, %arg7: memref<8x128xf32, #tpu.memory_space<vmem>>) attributes {dimension_semantics = [#tpu.dimension_semantics<arbitrary>], iteration_bounds = array<i64: 1>, scalar_prefetch = 2 : i64, scratch_operands = 0 : i64, tpu.core_type = #tpu.core_type<tc>, window_params = [{transform_indices = @transform_0, window_bounds = array<i64: 128, 128>}, {transform_indices = @transform_1, window_bounds = array<i64: 128, 128>}, {transform_indices = @transform_2, window_bounds = array<i64: 128, 1>}, {transform_indices = @transform_3, window_bounds = array<i64: 1, 128>}, {transform_indices = @transform_4, window_bounds = array<i64: 8, 128>}]} {
    %0 = arith.index_cast %arg0 : i32 to index
    %1 = memref.load %arg1[%0] : memref<1xi32, #tpu.memory_space<smem>>
    %2 = arith.index_cast %arg0 : i32 to index
    %3 = memref.load %arg2[%2] : memref<1xi32, #tpu.memory_space<smem>>
    %c0 = arith.constant 0 : index
    %c0_0 = arith.constant 0 : index
    %4 = vector.load %arg3[%c0, %c0_0] : memref<128x128xbf16, #tpu.memory_space<vmem>>, vector<128x128xbf16>
    %c0_1 = arith.constant 0 : index
    %c0_2 = arith.constant 0 : index
    %5 = vector.load %arg4[%c0_1, %c0_2] : memref<128x128xbf16, #tpu.memory_space<vmem>>, vector<128x128xbf16>
    %cst = arith.constant dense<0.000000e+00> : vector<128x128xf32>
    %6 = tpu.matmul %4, %5, %cst {dimension_numbers = #tpu.dot_dimension_numbers<[1], [1], [0], [0], [0, 0, 1, 0], [], []>} : vector<128x128xbf16>, vector<128x128xbf16>, vector<128x128xf32> -> vector<128x128xf32>
    %cst_3 = arith.constant 2.000000e+00 : f32
    %7 = vector.broadcast %cst_3 : f32 to vector<128x128xf32>
    %8 = arith.mulf %7, %6 : vector<128x128xf32>
    %cst_4 = arith.constant 2.000000e+00 : f32
    %9 = vector.broadcast %cst_4 : f32 to vector<128x128xf32>
    %10 = arith.subf %9, %8 : vector<128x128xf32>
    %cst_5 = arith.constant 0.000000e+00 : f32
    %11 = vector.broadcast %cst_5 : f32 to vector<128x128xf32>
    %12 = arith.maximumf %10, %11 : vector<128x128xf32>
    %13 = math.sqrt %12 : vector<128x128xf32>
    %c0_6 = arith.constant 0 : index
    %c0_7 = arith.constant 0 : index
    %14 = vector.load %arg5[%c0_6, %c0_7] : memref<128x1xi32, #tpu.memory_space<vmem>>, vector<128x1xi32>
    %c0_8 = arith.constant 0 : index
    %c0_9 = arith.constant 0 : index
    %15 = vector.load %arg6[%c0_8, %c0_9] : memref<1x128xi32, #tpu.memory_space<vmem>>, vector<1x128xi32>
    %16 = vector.broadcast %14 : vector<128x1xi32> to vector<128x128xi32>
    %17 = vector.broadcast %15 : vector<1x128xi32> to vector<128x128xi32>
    %18 = arith.cmpi eq, %16, %17 : vector<128x128xi32>
    %19 = tpu.iota {dimensions = array<i32: 0>} : vector<128x1xi32>
    %c128_i32 = arith.constant 128 : i32
    %20 = arith.muli %1, %c128_i32 : i32
    %21 = vector.broadcast %20 : i32 to vector<128x1xi32>
    %22 = arith.addi %19, %21 : vector<128x1xi32>
    %23 = tpu.iota {dimensions = array<i32: 1>} : vector<1x128xi32>
    %c128_i32_10 = arith.constant 128 : i32
    %24 = arith.muli %3, %c128_i32_10 : i32
    %25 = vector.broadcast %24 : i32 to vector<1x128xi32>
    %26 = arith.addi %23, %25 : vector<1x128xi32>
    %27 = vector.broadcast %26 : vector<1x128xi32> to vector<128x128xi32>
    %28 = vector.broadcast %22 : vector<128x1xi32> to vector<128x128xi32>
    %29 = arith.cmpi sgt, %27, %28 : vector<128x128xi32>
    %c8_i32 = arith.constant 8 : i32
    %30 = vector.broadcast %c8_i32 : i32 to vector<128x1xi32>
    %31 = arith.cmpi slt, %22, %30 : vector<128x1xi32>
    %c8_i32_11 = arith.constant 8 : i32
    %32 = vector.broadcast %c8_i32_11 : i32 to vector<1x128xi32>
    %33 = arith.cmpi slt, %26, %32 : vector<1x128xi32>
    %34 = vector.broadcast %31 : vector<128x1xi1> to vector<128x128xi1>
    %35 = vector.broadcast %33 : vector<1x128xi1> to vector<128x128xi1>
    %36 = arith.andi %34, %35 : vector<128x128xi1>
    %37 = arith.andi %29, %36 : vector<128x128xi1>
    %38 = arith.andi %18, %37 : vector<128x128xi1>
    %cst_12 = arith.constant dense<true> : vector<128x128xi1>
    %39 = arith.xori %18, %cst_12 : vector<128x128xi1>
    %40 = arith.andi %39, %37 : vector<128x128xi1>
    %cst_13 = arith.constant 0.000000e+00 : f32
    %41 = vector.broadcast %cst_13 : f32 to vector<128x128xf32>
    %42 = arith.select %38, %13, %41 : vector<128x128xi1>, vector<128x128xf32>
    %cst_14 = arith.constant 1.000000e+00 : f32
    %43 = vector.broadcast %cst_14 : f32 to vector<128x128xf32>
    %44 = arith.subf %43, %13 : vector<128x128xf32>
    %cst_15 = arith.constant 0.000000e+00 : f32
    %45 = vector.broadcast %cst_15 : f32 to vector<128x128xf32>
    %46 = arith.maximumf %44, %45 : vector<128x128xf32>
    %cst_16 = arith.constant 0.000000e+00 : f32
    %47 = vector.broadcast %cst_16 : f32 to vector<128x128xf32>
    %48 = arith.select %40, %46, %47 : vector<128x128xi1>, vector<128x128xf32>
    %cst_17 = arith.constant 1.000000e+00 : f32
    %49 = vector.broadcast %cst_17 : f32 to vector<128x1xf32>
    %cst_18 = arith.constant 1.000000e+00 : bf16
    %50 = vector.broadcast %cst_18 : bf16 to vector<128x1xbf16>
    %cst_19 = arith.constant dense<0.000000e+00> : vector<128x1xf32>
    %51 = tpu.matmul %42, %49, %cst_19 {dimension_numbers = #tpu.dot_dimension_numbers<[1], [0], [0], [1], [0, 0, 1, 1], [], []>} : vector<128x128xf32>, vector<128x1xf32>, vector<128x1xf32> -> vector<128x1xf32>
    %cst_20 = arith.constant dense<0.000000e+00> : vector<1xf32>
    %52 = vector.multi_reduction <add>, %51, %cst_20 [0] : vector<128x1xf32> to vector<1xf32>
    %53 = vector.shape_cast %52 : vector<1xf32> to vector<1x1xf32>
    %cst_21 = arith.constant 0.000000e+00 : f32
    %54 = vector.broadcast %cst_21 : f32 to vector<128x128xf32>
    %55 = arith.cmpf ogt, %42, %54 : vector<128x128xf32>
    %56 = arith.extui %55 : vector<128x128xi1> to vector<128x128xi32>
    %57 = arith.sitofp %56 : vector<128x128xi32> to vector<128x128xf32>
    %58 = arith.truncf %57 : vector<128x128xf32> to vector<128x128xbf16>
    %cst_22 = arith.constant dense<0.000000e+00> : vector<128x1xf32>
    %59 = tpu.matmul %58, %50, %cst_22 {dimension_numbers = #tpu.dot_dimension_numbers<[1], [0], [0], [1], [0, 0, 1, 1], [], []>} : vector<128x128xbf16>, vector<128x1xbf16>, vector<128x1xf32> -> vector<128x1xf32>
    %cst_23 = arith.constant dense<0.000000e+00> : vector<1xf32>
    %60 = vector.multi_reduction <add>, %59, %cst_23 [0] : vector<128x1xf32> to vector<1xf32>
    %61 = vector.shape_cast %60 : vector<1xf32> to vector<1x1xf32>
    %cst_24 = arith.constant dense<0.000000e+00> : vector<128x1xf32>
    %62 = tpu.matmul %48, %49, %cst_24 {dimension_numbers = #tpu.dot_dimension_numbers<[1], [0], [0], [1], [0, 0, 1, 1], [], []>} : vector<128x128xf32>, vector<128x1xf32>, vector<128x1xf32> -> vector<128x1xf32>
    %cst_25 = arith.constant dense<0.000000e+00> : vector<1xf32>
    %63 = vector.multi_reduction <add>, %62, %cst_25 [0] : vector<128x1xf32> to vector<1xf32>
    %64 = vector.shape_cast %63 : vector<1xf32> to vector<1x1xf32>
    %cst_26 = arith.constant 0.000000e+00 : f32
    %65 = vector.broadcast %cst_26 : f32 to vector<128x128xf32>
    %66 = arith.cmpf ogt, %48, %65 : vector<128x128xf32>
    %67 = arith.extui %66 : vector<128x128xi1> to vector<128x128xi32>
    %68 = arith.sitofp %67 : vector<128x128xi32> to vector<128x128xf32>
    %69 = arith.truncf %68 : vector<128x128xf32> to vector<128x128xbf16>
    %cst_27 = arith.constant dense<0.000000e+00> : vector<128x1xf32>
    %70 = tpu.matmul %69, %50, %cst_27 {dimension_numbers = #tpu.dot_dimension_numbers<[1], [0], [0], [1], [0, 0, 1, 1], [], []>} : vector<128x128xbf16>, vector<128x1xbf16>, vector<128x1xf32> -> vector<128x1xf32>
    %cst_28 = arith.constant dense<0.000000e+00> : vector<1xf32>
    %71 = vector.multi_reduction <add>, %70, %cst_28 [0] : vector<128x1xf32> to vector<1xf32>
    %72 = vector.shape_cast %71 : vector<1xf32> to vector<1x1xf32>
    %73 = tpu.iota {dimensions = array<i32: 0>} : vector<8x128xi32>
    %c0_i32 = arith.constant 0 : i32
    %74 = vector.broadcast %c0_i32 : i32 to vector<8x128xi32>
    %75 = arith.cmpi eq, %73, %74 : vector<8x128xi32>
    %cst_29 = arith.constant 0.000000e+00 : f32
    %76 = vector.shape_cast %53 : vector<1x1xf32> to vector<1x1xf32>
    %77 = vector.broadcast %76 : vector<1x1xf32> to vector<8x128xf32>
    %78 = vector.broadcast %cst_29 : f32 to vector<8x128xf32>
    %79 = arith.select %75, %77, %78 : vector<8x128xi1>, vector<8x128xf32>
    %c1_i32 = arith.constant 1 : i32
    %80 = vector.broadcast %c1_i32 : i32 to vector<8x128xi32>
    %81 = arith.cmpi eq, %73, %80 : vector<8x128xi32>
    %cst_30 = arith.constant 0.000000e+00 : f32
    %82 = vector.shape_cast %61 : vector<1x1xf32> to vector<1x1xf32>
    %83 = vector.broadcast %82 : vector<1x1xf32> to vector<8x128xf32>
    %84 = vector.broadcast %cst_30 : f32 to vector<8x128xf32>
    %85 = arith.select %81, %83, %84 : vector<8x128xi1>, vector<8x128xf32>
    %86 = arith.addf %79, %85 : vector<8x128xf32>
    %c2_i32 = arith.constant 2 : i32
    %87 = vector.broadcast %c2_i32 : i32 to vector<8x128xi32>
    %88 = arith.cmpi eq, %73, %87 : vector<8x128xi32>
    %cst_31 = arith.constant 0.000000e+00 : f32
    %89 = vector.shape_cast %64 : vector<1x1xf32> to vector<1x1xf32>
    %90 = vector.broadcast %89 : vector<1x1xf32> to vector<8x128xf32>
    %91 = vector.broadcast %cst_31 : f32 to vector<8x128xf32>
    %92 = arith.select %88, %90, %91 : vector<8x128xi1>, vector<8x128xf32>
    %93 = arith.addf %86, %92 : vector<8x128xf32>
    %c3_i32 = arith.constant 3 : i32
    %94 = vector.broadcast %c3_i32 : i32 to vector<8x128xi32>
    %95 = arith.cmpi eq, %73, %94 : vector<8x128xi32>
    %cst_32 = arith.constant 0.000000e+00 : f32
    %96 = vector.shape_cast %72 : vector<1x1xf32> to vector<1x1xf32>
    %97 = vector.broadcast %96 : vector<1x1xf32> to vector<8x128xf32>
    %98 = vector.broadcast %cst_32 : f32 to vector<8x128xf32>
    %99 = arith.select %95, %97, %98 : vector<8x128xi1>, vector<8x128xf32>
    %100 = arith.addf %93, %99 : vector<8x128xf32>
    %101 = arith.cmpi eq, %1, %3 : i32
    %102 = arith.extui %101 : i1 to i32
    %c0_i32_33 = arith.constant 0 : i32
    %103 = arith.cmpi ne, %102, %c0_i32_33 : i32
    scf.if %103 {
      %c0_35 = arith.constant 0 : index
      %c0_36 = arith.constant 0 : index
      %107 = vector.load %arg7[%c0_35, %c0_36] : memref<8x128xf32, #tpu.memory_space<vmem>>, vector<8x128xf32>
      tpu.vector_store %arg7[%c0_35, %c0_36], %100 {strides = array<i32>} : memref<8x128xf32, #tpu.memory_space<vmem>>, vector<8x128xf32>,
    } else {
    }
    %104 = arith.cmpi ne, %1, %3 : i32
    %105 = arith.extui %104 : i1 to i32
    %c0_i32_34 = arith.constant 0 : i32
    %106 = arith.cmpi ne, %105, %c0_i32_34 : i32
    scf.if %106 {
      %c0_35 = arith.constant 0 : index
      %c0_36 = arith.constant 0 : index
      %107 = vector.load %arg7[%c0_35, %c0_36] : memref<8x128xf32, #tpu.memory_space<vmem>>, vector<8x128xf32>
      %108 = arith.addf %107, %100 : vector<8x128xf32>
      %c0_37 = arith.constant 0 : index
      %c0_38 = arith.constant 0 : index
      %109 = vector.load %arg7[%c0_37, %c0_38] : memref<8x128xf32, #tpu.memory_space<vmem>>, vector<8x128xf32>
      tpu.vector_store %arg7[%c0_37, %c0_38], %108 {strides = array<i32>} : memref<8x128xf32, #tpu.memory_space<vmem>>, vector<8x128xf32>,
    } else {
    }
    return
  }
  func.func @transform_0(%arg0: i32, %arg1: memref<1xi32, #tpu.memory_space<smem>>, %arg2: memref<1xi32, #tpu.memory_space<smem>>) -> (i32, i32) {
    %0 = arith.index_cast %arg0 : i32 to index
    %1 = memref.load %arg1[%0] : memref<1xi32, #tpu.memory_space<smem>>
    %c0_i32 = arith.constant 0 : i32
    %c0_i32_0 = arith.constant 0 : i32
    return %1, %c0_i32 : i32, i32
  }
  func.func @transform_1(%arg0: i32, %arg1: memref<1xi32, #tpu.memory_space<smem>>, %arg2: memref<1xi32, #tpu.memory_space<smem>>) -> (i32, i32) {
    %0 = arith.index_cast %arg0 : i32 to index
    %1 = memref.load %arg2[%0] : memref<1xi32, #tpu.memory_space<smem>>
    %c0_i32 = arith.constant 0 : i32
    %c0_i32_0 = arith.constant 0 : i32
    return %1, %c0_i32 : i32, i32
  }
  func.func @transform_2(%arg0: i32, %arg1: memref<1xi32, #tpu.memory_space<smem>>, %arg2: memref<1xi32, #tpu.memory_space<smem>>) -> (i32, i32) {
    %0 = arith.index_cast %arg0 : i32 to index
    %1 = memref.load %arg1[%0] : memref<1xi32, #tpu.memory_space<smem>>
    %c0_i32 = arith.constant 0 : i32
    %c0_i32_0 = arith.constant 0 : i32
    return %1, %c0_i32 : i32, i32
  }
  func.func @transform_3(%arg0: i32, %arg1: memref<1xi32, #tpu.memory_space<smem>>, %arg2: memref<1xi32, #tpu.memory_space<smem>>) -> (i32, i32) {
    %0 = arith.index_cast %arg0 : i32 to index
    %1 = memref.load %arg2[%0] : memref<1xi32, #tpu.memory_space<smem>>
    %c0_i32 = arith.constant 0 : i32
    %c0_i32_0 = arith.constant 0 : i32
    return %c0_i32, %1 : i32, i32
  }
  func.func @transform_4(%arg0: i32, %arg1: memref<1xi32, #tpu.memory_space<smem>>, %arg2: memref<1xi32, #tpu.memory_space<smem>>) -> (i32, i32) {
    %0 = arith.index_cast %arg0 : i32 to index
    %1 = memref.load %arg1[%0] : memref<1xi32, #tpu.memory_space<smem>>
    %c0_i32 = arith.constant 0 : i32
    %c0_i32_0 = arith.constant 0 : i32
    return %1, %c0_i32 : i32, i32
  }
}

</mosaic_0001>

<bundles_post_ra>
// kernel: tpu_custom_call.1
= control target key start
LH: loop header
LB: loop body
LE: loop exit
PB: predicated region body
PF: predicated region fallthrough
CT: control target
= control target key end

     0   :  { %s3093_s0 = inlined_call_operand.<no memory space> [shape: s32[1], index: 0, kind: input, shape index: {}]   ;;  %s3094_s1 = inlined_call_operand.<no memory space> [shape: s32[1], index: 1, kind: input, shape index: {}]   ;;  %s3095_s2 = inlined_call_operand.vmem [shape: bf16[128,128], index: 2, kind: input, shape index: {}]   ;;  %s3096_s3 = inlined_call_operand.vmem [shape: bf16[128,128], index: 3, kind: input, shape index: {}]   ;;  %s3097_s4 = inlined_call_operand.vmem [shape: s32[128,1], index: 4, kind: input, shape index: {}]   ;;  %s3098_s5 = inlined_call_operand.vmem [shape: s32[1,128], index: 5, kind: input, shape index: {}]   ;;  %s3099_s6 = inlined_call_operand.hbm [shape: f32[8,128], index: 6, kind: output, shape index: {}]  }
   0x1   :  { %11 = sst [smem:[#allocation3]] %s3093_s0 }
   0x2   :  { %13 = vsyncpa [#allocation6], 0  ;;  %s1432_s25 = sshll.u32 %s3094_s1, 4  ;;  %s1767_s0 = sld [smem:[#allocation3]]  ;;  %v1717_v8 = vmov 0   ;;  %v1718_v30 = vmov 1.0   ;;  %v605_v35 = vlaneseq }
   0x3   :  { %p83_p0 = scmp.lt.s32.totalorder %s1432_s25, 15  ;;  %1655 = vset.pattern.permute.xlu0 %v1717_v8  ;;  %1656 = vset.pattern.permute.xlu1 %v1717_v8  ;;  %p98_p2 = scmp.lt.s32.totalorder %s3094_s1, 0  ;;  %v1719_v32 = vmov 1065369472   ;;  %vm3103_vm5 = vmmov 1   ;;  %v3172_v46 = vmov 0 }
   0x4   :  { %1657 = vset.pattern.permute.xlu2 %v1717_v8  ;;  %1617 = vmatpush.msra.mxu1 %v1718_v30  ;;  %s1501_s23 = sshll.u32 %s3094_s1, 7  ;;  %v1859_v37 = vshrl.u32 %v605_v35, 7  ;;  %v641_v38 = vand.u32 127, %v605_v35  ;;  %v3174_v48 = vmov 0  ;;  %v3176_v50 = vmov 0 }
   0x5   :  { %s3425_s25 = smov (!%p83_p0, %s1432_s25), 15  ;;  %1015 = vmatpush.bf16.msra.mxu2 %v1719_v32  ;;  %1633 = vmatpush.bf16.msra.mxu3 %v1719_v32  ;;  %v643_v40 = vstv %s1501_s23  ;;  %v3178_v52 = vmov 0 }
   0x6   :  { %s1433_s26 = sshll.u32 %s3425_s25, 2  ;;  %1618 = vmatpush.msra.mxu1 %v1718_v30  ;;  %3171 = vst [vmem:[#allocation8_spill] sm:$0xff] %v1859_v37  ;;  %v1867_v41 = vadd.s32 %v643_v40, %v641_v38  ;;  %v607_v43 = vadd.s32 8, %v1859_v37  ;;  %v608_v54 = vadd.s32 16, %v1859_v37  ;;  %v609_v61 = vadd.s32 24, %v1859_v37 }
   0x7   :  { %s86_s29 = scalar_lea.vmem %s3096_s3, %s1433_s26  ;;  %v3190_v40 = vmov 0 }
   0x8   :  { %v1616_v0 = vld [vmem:[%s86_s29 + $0x38] sm:$0xff]  ;;  %v1615_v1 = vld [vmem:[%s86_s29 + $0x30] sm:$0xff]  ;;  %v1614_v2 = vld [vmem:[%s86_s29 + $0x28] sm:$0xff]  ;;  %s1430_s30 = sshll.u32 %s1767_s0, 4  ;;  %1619 = vmatpush.msra.mxu1 %v1718_v30  ;;  %s1500_s20 = sshll.u32 %s1767_s0, 7  ;;  %vm3106_vm0 = vcmp.lt.s32.totalorder %v1867_v41, 8 }
   0x9   :  { %234 = vmatpush.bf16.xpose.msra.mxu0 %v1616_v0  ;;  %v1613_v3 = vld [vmem:[%s86_s29 + $0x20] sm:$0xff]  ;;  %v1612_v4 = vld [vmem:[%s86_s29 + $0x18] sm:$0xff]  ;;  %p75_p1 = scmp.lt.s32.totalorder %s1430_s30, 15  ;;  %v1611_v5 = vld [vmem:[%s86_s29 + $0x10] sm:$0xff]  ;;  %1016 = vmatpush.bf16.msra.mxu2 %v1719_v32  ;;  %v1863_v39 = vstv %s1500_s20  ;;  %v3180_v0 = vmov 0  ;;  %p1598_p3 = scmp.ne.s32.totalorder %s1767_s0, %s3094_s1 }
   0xa   :  { %v1610_v6 = vld [vmem:[%s86_s29 + $0x8] sm:$0xff]  ;;  %v1609_v9 = vld [vmem:[%s86_s29] sm:$0xff]  ;;  %s1791_s16 = scalar_select %p98_p2, %s3094_s1, 0  ;;  %1620 = vmatpush.msra.mxu1 %v1718_v30  ;;  %1634 = vmatpush.bf16.msra.mxu3 %v1719_v32  ;;  %v624_v42 = vadd.s32 %v1863_v39, %v1859_v37  ;;  %v625_v45 = vadd.s32 %v1863_v39, %v607_v43  ;;  %v626_v56 = vadd.s32 %v1863_v39, %v608_v54 }
   0xb   :  { %s3427_s30 = smov (!%p75_p1, %s1430_s30), 15 }
   0xc   :  { %s1435_s7 = sshll.u32 %s3427_s30, 3  ;;  %s1431_s10 = sshll.u32 %s3427_s30, 2  ;;  %1621 = vmatpush.msra.mxu1 %v1718_v30  ;;  %vm661_vm2 = vcmp.lt.s32.totalorder %v624_v42, 8  ;;  %vm646_vm3 = vcmp.gt.s32.totalorder %v1867_v41, %v625_v45  ;;  %vm662_vm4 = vcmp.lt.s32.totalorder %v625_v45, 8  ;;  %vm645_vm8 = vcmp.gt.s32.totalorder %v1867_v41, %v624_v42 }
   0xd   :  { %s1773_s9 = scalar_lea.vmem %s3097_s4, %s1435_s7  ;;  %s1779_s13 = scalar_lea.vmem %s3095_s2, %s1431_s10  ;;  %1017 = vmatpush.bf16.msra.mxu2 %v1719_v32  ;;  %vm713_vm7 = vmand %vm662_vm4, %vm3106_vm0  ;;  %v611_v42 = vadd.s32 40, %v1859_v37 }
   0xe   :  { %v524_v7 = vld [vmem:[%s1773_s9 + $0x8] sm:$0xff]  ;;  %v1601_v10 = vld [vmem:[%s1779_s13] sm:$0xff]  ;;  %v525_v13 = vld [vmem:[%s1773_s9 + $0x10] sm:$0xff]  ;;  %s100_s19 = scalar_lea.vmem %s3098_s5, %s1791_s16  ;;  %1622 = vmatpush.msra.mxu1 %v1718_v30  ;;  %1635 = vmatpush.bf16.msra.mxu3 %v1719_v32 }
   0xf   :  { %544 = vperm.xlu0 %1655, %v524_v7   ;;  %v523_v11 = vld [vmem:[%s1773_s9] sm:$0xff]  ;;  %v1602_v12 = vld [vmem:[%s1779_s13 + $0x8] sm:$0xff]  ;;  %547 = vperm.xlu1 %1656, %v525_v13   ;;  %v526_v14 = vld [vmem:[%s1773_s9 + $0x18] sm:$0xff] }
  0x10   :  { %v1603_v15 = vld [vmem:[%s1779_s13 + $0x10] sm:$0xff]  ;;  %v527_v16 = vld [vmem:[%s1773_s9 + $0x20] sm:$0xff]  ;;  %v528_v17 = vld [vmem:[%s1773_s9 + $0x28] sm:$0xff]  ;;  %1623 = vmatpush.msra.mxu1 %v1718_v30 }
  0x11   :  { %235 = vmatpush.bf16.xpose.msra.mxu0 %v1615_v1  ;;  %v1604_v18 = vld [vmem:[%s1779_s13 + $0x18] sm:$0xff]  ;;  %v529_v19 = vld [vmem:[%s1773_s9 + $0x30] sm:$0xff]  ;;  %v535_v20 = vld [vmem:[%s1773_s9 + $0x60] sm:$0xff]  ;;  %1018 = vmatpush.bf16.msra.mxu2 %v1719_v32 }
  0x12   :  { %v538_v21 = vld [vmem:[%s1773_s9 + $0x78] sm:$0xff]  ;;  %577 = vperm.xlu2 %1657, %v535_v20   ;;  %v1605_v22 = vld [vmem:[%s1779_s13 + $0x20] sm:$0xff]  ;;  %v536_v23 = vld [vmem:[%s1773_s9 + $0x68] sm:$0xff]  ;;  %1624 = vmatpush.msra.mxu1 %v1718_v30 }
  0x13   :  { %v531_v24 = vld [vmem:[%s1773_s9 + $0x40] sm:$0xff]  ;;  %v532_v25 = vld [vmem:[%s1773_s9 + $0x48] sm:$0xff]  ;;  %v537_v26 = vld [vmem:[%s1773_s9 + $0x70] sm:$0xff]  ;;  %1636 = vmatpush.bf16.msra.mxu3 %v1719_v32 }
  0x14   :  { %v1606_v27 = vld [vmem:[%s1779_s13 + $0x28] sm:$0xff]  ;;  %v530_v28 = vld [vmem:[%s1773_s9 + $0x38] sm:$0xff]  ;;  %v1607_v31 = vld [vmem:[%s1779_s13 + $0x30] sm:$0xff]  ;;  %1625 = vmatpush.msra.mxu1 %v1718_v30 }
  0x15   :  { %v534_v29 = vld [vmem:[%s1773_s9 + $0x58] sm:$0xff]  ;;  %v533_v33 = vld [vmem:[%s1773_s9 + $0x50] sm:$0xff]  ;;  %v1877_v44 = vld [vmem:[%s100_s19] ss:$0 sm:$0xff]  ;;  %1019 = vmatpush.bf16.msra.mxu2 %v1719_v32 }
  0x16   :  { %1626 = vmatpush.msra.mxu1 %v1718_v30  ;;  %v1608_v34 = vld [vmem:[%s1779_s13 + $0x38] sm:$0xff]  ;;  %vm712_vm9 = vmand %vm661_vm2, %vm3106_vm0  ;;  %vm663_vm2 = vcmp.lt.s32.totalorder %v626_v56, 8 }
  0x17   :  { %541 = vperm.xlu0 %1655, %v523_v11   ;;  %550 = vperm.xlu1 %1656, %v526_v14   ;;  %vm1905_vm10 = vmand %vm646_vm3, %vm713_vm7  ;;  %vm647_vm3 = vcmp.gt.s32.totalorder %v1867_v41, %v626_v56  ;;  %v610_v11 = vadd.s32 32, %v1859_v37  ;;  %v3184_v14 = vmov 0 }
  0x18   :  { %1627 = vmatpush.msra.mxu1 %v1718_v30  ;;  %1637 = vmatpush.bf16.msra.mxu3 %v1719_v32  ;;  %v3175_v48 = vsel %vm1905_vm10, 4294967295, %v3174_v48  ;;  %vm1913_vm12 = vmand %vm645_vm8, %vm712_vm9 }
  0x19   :  { %236 = vmatpush.bf16.xpose.msra.mxu0 %v1614_v2  ;;  %1020 = vmatpush.bf16.msra.mxu2 %v1719_v32  ;;  %v3177_v50 = vsel %vm1913_vm12, 4294967295, %v3176_v50  ;;  %vm714_vm4 = vmand %vm663_vm2, %vm3106_vm0  ;;  %v3182_v2 = vmov 0 }
  0x1a   :  { %580 = vperm.xlu2 %1657, %v536_v23   ;;  %1628 = vmatpush.msra.mxu1 %v1718_v30  ;;  %vm1957_vm7 = vmand %vm647_vm3, %vm714_vm4 }
  0x1b   :  { %v3181_v0 = vsel %vm1957_vm7, 4294967295, %v3180_v0 }
  0x1c   :  { %1629 = vmatpush.msra.mxu1 %v1718_v30  ;;  %1638 = vmatpush.bf16.msra.mxu3 %v1719_v32 }
  0x1d   :  { %1021 = vmatpush.bf16.msra.mxu2 %v1719_v32 }
  0x1e   :  { %1630 = vmatpush.msra.mxu1 %v1718_v30 }
  0x1f   :  { %553 = vperm.xlu0 %1655, %v527_v16   ;;  %556 = vperm.xlu1 %1656, %v528_v17   ;;  %v3186_v17 = vmov 0 }
  0x20   :  { %1631 = vmatpush.msra.mxu1 %v1718_v30  ;;  %1639 = vmatpush.bf16.msra.mxu3 %v1719_v32 }
  0x21   :  { %237 = vmatpush.bf16.xpose.msra.mxu0 %v1613_v3  ;;  %1022 = vmatpush.bf16.msra.mxu2 %v1719_v32  ;;  %v627_v3 = vadd.s32 %v1863_v39, %v609_v61 }
  0x22   :  { %583 = vperm.xlu2 %1657, %v537_v26   ;;  %1632 = vmatpush.msra.mxu1 %v1718_v30 }
  0x23   :  { %vm664_vm3 = vcmp.lt.s32.totalorder %v627_v3, 8  ;;  %vm648_vm4 = vcmp.gt.s32.totalorder %v1867_v41, %v627_v3 }
  0x24   :  { %1259 = vmatpush.bf16.msrb.mxu1 %v1719_v32  ;;  %1640 = vmatpush.bf16.msra.mxu3 %v1719_v32  ;;  %vm715_vm11 = vmand %vm664_vm3, %vm3106_vm0 }
  0x25   :  { %1641 = vmatpush.bf16.msrb.mxu2 %v1719_v32  ;;  %vm1994_vm2 = vmand %vm648_vm4, %vm715_vm11 }
  0x26   :  { %v3185_v14 = vsel %vm1994_vm2, 4294967295, %v3184_v14 }
  0x27   :  { %559 = vperm.xlu1 %1656, %v529_v19   ;;  %586 = vperm.xlu0 %1655, %v538_v21  }
  0x28   :  { %1260 = vmatpush.bf16.msrb.mxu1 %v1719_v32  ;;  %1101 = vmatpush.msrb.mxu3 %v1718_v30 }
  0x29   :  { %238 = vmatpush.bf16.xpose.msra.mxu0 %v1612_v4  ;;  %1642 = vmatpush.bf16.msrb.mxu2 %v1719_v32 }
  0x2a   :  { %562 = vperm.xlu2 %1657, %v530_v28   ;;  %1102 = vmatpush.msrb.mxu3 %v1718_v30 }
  0x2c   :  { %1261 = vmatpush.bf16.msrb.mxu1 %v1719_v32  ;;  %1103 = vmatpush.msrb.mxu3 %v1718_v30 }
  0x2d   :  { %1643 = vmatpush.bf16.msrb.mxu2 %v1719_v32 }
  0x2e   :  { %1104 = vmatpush.msrb.mxu3 %v1718_v30 }
  0x2f   :  { %565 = vperm.xlu0 %1655, %v531_v24   ;;  %568 = vperm.xlu1 %1656, %v532_v25  }
  0x30   :  { %1262 = vmatpush.bf16.msrb.mxu1 %v1719_v32  ;;  %1105 = vmatpush.msrb.mxu3 %v1718_v30 }
  0x31   :  { %239 = vmatpush.bf16.xpose.msra.mxu0 %v1611_v5  ;;  %1644 = vmatpush.bf16.msrb.mxu2 %v1719_v32 }
  0x32   :  { %571 = vperm.xlu2 %1657, %v533_v33   ;;  %1106 = vmatpush.msrb.mxu3 %v1718_v30 }
  0x34   :  { %1263 = vmatpush.bf16.msrb.mxu1 %v1719_v32  ;;  %1107 = vmatpush.msrb.mxu3 %v1718_v30 }
  0x35   :  { %1645 = vmatpush.bf16.msrb.mxu2 %v1719_v32 }
  0x36   :  { %1108 = vmatpush.msrb.mxu3 %v1718_v30 }
  0x37   :  { %574 = vperm.xlu0 %1655, %v534_v29  }
  0x38   :  { %1264 = vmatpush.bf16.msrb.mxu1 %v1719_v32  ;;  %1109 = vmatpush.msrb.mxu3 %v1718_v30 }
  0x39   :  { %240 = vmatpush.bf16.xpose.msra.mxu0 %v1610_v6  ;;  %1646 = vmatpush.bf16.msrb.mxu2 %v1719_v32 }
  0x3a   :  { %1110 = vmatpush.msrb.mxu3 %v1718_v30 }
  0x3c   :  { %1265 = vmatpush.bf16.msrb.mxu1 %v1719_v32  ;;  %1111 = vmatpush.msrb.mxu3 %v1718_v30 }
  0x3d   :  { %1647 = vmatpush.bf16.msrb.mxu2 %v1719_v32 }
  0x3e   :  { %1112 = vmatpush.msrb.mxu3 %v1718_v30 }
  0x40   :  { %1266 = vmatpush.bf16.msrb.mxu1 %v1719_v32  ;;  %1113 = vmatpush.msrb.mxu3 %v1718_v30 }
  0x41   :  { %241 = vmatpush.bf16.xpose.msra.mxu0 %v1609_v9  ;;  %1648 = vmatpush.bf16.msrb.mxu2 %v1719_v32 }
  0x42   :  { %1114 = vmatpush.msrb.mxu3 %v1718_v30 }
  0x44   :  { %1115 = vmatpush.msrb.mxu3 %v1718_v30 }
  0x46   :  { %1116 = vmatpush.msrb.mxu3 %v1718_v30 }
  0x48   :  { %242 = vmatmul.bf16.vlgmr.msra.gmra.mxu0 %v1601_v10 }
  0x49   :  { %856 = vmatpush.msrb.mxu0 %v1718_v30 }
  0x4b   :  { %857 = vmatpush.msrb.mxu0 %v1718_v30 }
  0x4d   :  { %858 = vmatpush.msrb.mxu0 %v1718_v30 }
  0x4f   :  { %859 = vmatpush.msrb.mxu0 %v1718_v30 }
  0x51   :  { %860 = vmatpush.msrb.mxu0 %v1718_v30 }
  0x53   :  { %861 = vmatpush.msrb.mxu0 %v1718_v30 }
  0x55   :  { %862 = vmatpush.msrb.mxu0 %v1718_v30 }
  0x57   :  { %863 = vmatpush.msrb.mxu0 %v1718_v30 }
  0x58   :  { %247 = vmatmul.bf16.gmra.mxu0 %v1602_v12 }
  0x59   :  { %864 = vmatpush.msrb.mxu0 %v1718_v30 }
  0x5b   :  { %865 = vmatpush.msrb.mxu0 %v1718_v30 }
  0x5d   :  { %866 = vmatpush.msrb.mxu0 %v1718_v30 }
  0x5f   :  { %867 = vmatpush.msrb.mxu0 %v1718_v30 }
  0x61   :  { %868 = vmatpush.msrb.mxu0 %v1718_v30 }
  0x63   :  { %869 = vmatpush.msrb.mxu0 %v1718_v30 }
  0x65   :  { %870 = vmatpush.msrb.mxu0 %v1718_v30 }
  0x67   :  { %871 = vmatpush.msrb.mxu0 %v1718_v30 }
  0x68   :  { %252 = vmatmul.bf16.gmra.mxu0 %v1603_v15 }
  0x78   :  { %257 = vmatmul.bf16.gmra.mxu0 %v1604_v18  ;;  %v628_v18 = vadd.s32 %v1863_v39, %v610_v11 }
  0x7a   :  { %vm665_vm4 = vcmp.lt.s32.totalorder %v628_v18, 8  ;;  %vm649_vm15 = vcmp.gt.s32.totalorder %v1867_v41, %v628_v18 }
  0x81   :  { %v1856_v36 = vpop.permute.xlu0 %544  ;;  %v1945_v59 = vpop.permute.xlu1 %547 }
  0x82   :  { %vm3102_vm1 = vcmp.eq.s32.totalorder %v1856_v36, %v1877_v44  ;;  %vm3100_vm8 = vcmp.eq.s32.totalorder %v1945_v59, %v1877_v44 }
  0x83   :  { %vm1891_vm6 = vmxor %vm3102_vm1, %vm3103_vm5 }
  0x84   :  { %v3173_v46 = vsel %vm1891_vm6, 4294967295, %v3172_v46  ;;  %vm1969_vm9 = vmxor %vm3100_vm8, %vm3103_vm5 }
  0x85   :  { %v3183_v2 = vsel %vm1969_vm9, 4294967295, %v3182_v2 }
  0x88   :  { %262 = vmatmul.bf16.gmra.mxu0 %v1605_v22 }
  0x89   :  { %v1901_v47 = vpop.permute.xlu0 %541  ;;  %v1986_v8 = vpop.permute.xlu1 %550 }
  0x8a   :  { %vm589_vm13 = vcmp.eq.s32.totalorder %v1901_v47, %v1877_v44  ;;  %vm3101_vm3 = vcmp.eq.s32.totalorder %v1986_v8, %v1877_v44 }
  0x8b   :  { %vm1924_vm14 = vmxor %vm589_vm13, %vm3103_vm5 }
  0x8c   :  { %v3179_v52 = vsel %vm1924_vm14, 4294967295, %v3178_v52  ;;  %vm2006_vm8 = vmxor %vm3101_vm3, %vm3103_vm5 }
  0x8d   :  { %v3187_v17 = vsel %vm2006_vm8, 4294967295, %v3186_v17  ;;  %vm2026_vm1 = vmand %vm589_vm13, %vm1913_vm12 }
  0x8e   :  { %vm716_vm5 = vmand %vm665_vm4, %vm3106_vm0 }
  0x8f   :  { %vm2046_vm13 = vmand %vm649_vm15, %vm716_vm5 }
  0x90   :  { %v3191_v40 = vsel %vm2046_vm13, 4294967295, %v3190_v40  ;;  %vm3197_vm4 = vmand %vm1924_vm14, %vm1913_vm12  ;;  %vm3201_vm12 = vcmp.lt.s32.totalorder %v1867_v41, 8 }
  0x91   :  { %3192 = vst [vmem:[#allocation9_spill] sm:$0xff] %v3191_v40  ;;  %v2117_v18 = vpop.permute.xlu1 %556 }
  0x98   :  { %267 = vmatmul.bf16.gmra.mxu0 %v1606_v27  ;;  %v2036_v27 = vpop.permute.xlu0 %553 }
  0xa8   :  { %272 = vmatmul.bf16.gmra.mxu0 %v1607_v31  ;;  %v2039_v31 = vpop.permute.xlu2 %577 }
  0xb8   :  { %277 = vmatmul.bf16.gmra.mxu0 %v1608_v34 }
  0xc5   :  { %v243_v49 = vpop.f32.mrf.mxu0 }
  0xc6   :  { %v283_v51 = vmul.f32 2.0, %v243_v49  ;;  %v3194_v49 = vmov 0 }
  0xc8   :  { %v299_v53 = vsub.f32 2.0, %v283_v51 }
  0xca   :  { %v1936_v55 = vmax.f32 %v299_v53, 0.0 }
  0xcc   :  { %1659 = vrsqrt.f32 %v1936_v55  ;;  %vm338_vm3 = vcmp.eq.f32.partialorder %v1936_v55, inf  ;;  %v341_v23 = vand.u32 2147483648, %v1936_v55  ;;  %vm340_vm11 = vcmp.eq.f32.partialorder %v1936_v55, 0.0 }
  0xcd   :  { %v245_v57 = vpop.f32.mrf.mxu0 }
  0xce   :  { %v284_v58 = vmul.f32 2.0, %v245_v57 }
  0xd0   :  { %v300_v60 = vsub.f32 2.0, %v284_v58 }
  0xd2   :  { %v1660_v62 = vpop.eup %1659  ;;  %v1955_v63 = vmax.f32 %v300_v60, 0.0  ;;  %v629_v60 = vadd.s32 %v1863_v39, %v611_v42 }
  0xd3   :  { %v332_v1 = vmul.f32 %v1660_v62, %v1936_v55 }
  0xd4   :  { %1661 = vrsqrt.f32 %v1955_v63  ;;  %vm350_vm0 = vcmp.eq.f32.partialorder %v1955_v63, inf  ;;  %v353_v58 = vand.u32 2147483648, %v1955_v63 }
  0xd5   :  { %v248_v4 = vpop.f32.mrf.mxu0  ;;  %v333_v5 = vmul.f32 %v1660_v62, %v332_v1 }
  0xd6   :  { %v285_v6 = vmul.f32 2.0, %v248_v4 }
  0xd7   :  { %v334_v7 = vmul.f32 0.5, %v333_v5 }
  0xd8   :  { %v301_v9 = vsub.f32 2.0, %v285_v6 }
  0xd9   :  { %v335_v10 = vsub.f32 1.5, %v334_v7 }
  0xda   :  { %v1662_v12 = vpop.eup %1661  ;;  %v1992_v13 = vmax.f32 %v301_v9, 0.0 }
  0xdb   :  { %v336_v15 = vmul.f32 %v1660_v62, %v335_v10  ;;  %v344_v16 = vmul.f32 %v1662_v12, %v1955_v63 }
  0xdc   :  { %1663 = vrsqrt.f32 %v1992_v13 }
  0xdd   :  { %v250_v19 = vpop.f32.mrf.mxu0  ;;  %v337_v20 = vmul.f32 %v336_v15, %v1936_v55  ;;  %v345_v21 = vmul.f32 %v1662_v12, %v344_v16 }
  0xde   :  { %v286_v22 = vmul.f32 2.0, %v250_v19 }
  0xdf   :  { %v339_v25 = vsel %vm338_vm3, %v1936_v55, %v337_v20  ;;  %v346_v26 = vmul.f32 0.5, %v345_v21  ;;  %vm3105_vm3 = vcmp.eq.s32.totalorder %v2036_v27, %v1877_v44  ;;  %v365_v21 = vand.u32 2147483648, %v1992_v13 }
  0xe0   :  { %v302_v28 = vsub.f32 2.0, %v286_v22  ;;  %v342_v29 = vsel %vm340_vm11, %v341_v23, %v339_v25  ;;  %vm3193_vm11 = vmmov 1  }
  0xe1   :  { %v808_v33 = vsub.f32 1.0, %v342_v29  ;;  %1502 = vmatmul.msk.f32.vlgmr.msrb.gmra.mxu0 %vm2026_vm1, %v342_v29  ;;  %v347_v34 = vsub.f32 1.5, %v346_v26  ;;  %vm2061_vm5 = vmxor %vm3105_vm3, %vm3193_vm11  ;;  %vm3198_vm3 = vcmp.eq.s32.totalorder %v1856_v36, %v1877_v44  ;;  %v792_v61 = vsel %vm2026_vm1, %v342_v29, 0.0 }
  0xe2   :  { %v1664_v35 = vpop.eup %1663  ;;  %v2044_v38 = vmax.f32 %v302_v28, 0.0  ;;  %v3195_v49 = vsel %vm2061_vm5, 4294967295, %v3194_v49  ;;  %vm2086_vm15 = vmand %vm3198_vm3, %vm1905_vm10  ;;  %vm666_vm3 = vcmp.lt.s32.totalorder %v629_v60, 8  ;;  %v3206_v26 = vmov 0 }
  0xe3   :  { %v2054_v43 = vmax.f32 %v808_v33, 0.0  ;;  %v348_v45 = vmul.f32 %v1662_v12, %v347_v34  ;;  %v356_v47 = vmul.f32 %v1664_v35, %v1992_v13  ;;  %3196 = vst [vmem:[#allocation10_spill] sm:$0xff] %v3195_v49  ;;  %v3129_v12 = vmov 1.0|1.0   ;;  %vm717_vm14 = vmand %vm666_vm3, %vm3201_vm12 }
  0xe4   :  { %1665 = vrsqrt.f32 %v2044_v38  ;;  %vm3205_vm12 = vmand %vm1891_vm6, %vm1905_vm10  ;;  %vm364_vm3 = vcmp.eq.f32.partialorder %v1992_v13, 0.0  ;;  %vm3111_vm5 = vcmp.eq.s32.totalorder %v2117_v18, %v1877_v44  ;;  %v377_v56 = vand.u32 2147483648, %v2044_v38 }
  0xe5   :  { %v2077_v51 = vsel %vm3197_vm4, %v2054_v43, 0.0  ;;  %v253_v53 = vpop.f32.mrf.mxu0  ;;  %v349_v54 = vmul.f32 %v348_v45, %v1955_v63  ;;  %v357_v55 = vmul.f32 %v1664_v35, %v356_v47  ;;  %vm352_vm4 = vcmp.eq.f32.partialorder %v1955_v63, 0.0 }
  0xe6   :  { %v287_v57 = vmul.f32 2.0, %v253_v53  ;;  %vm3223_vm10 = vcmp.lt.s32.totalorder %v1867_v41, 8 }
  0xe7   :  { %v351_v62 = vsel %vm350_vm0, %v1955_v63, %v349_v54  ;;  %v358_v36 = vmul.f32 0.5, %v357_v55  ;;  %vm959_vm0 = vcmp.gt.f32.partialorder %v792_v61, 0.0  ;;  %v2106_v63 = vpop.permute.xlu2 %580 }
  0xe8   :  { %v303_v1 = vsub.f32 2.0, %v287_v57  ;;  %v354_v3 = vsel %vm352_vm4, %v353_v58, %v351_v62 }
  0xe9   :  { %v809_v4 = vsub.f32 1.0, %v354_v3  ;;  %1503 = vmatmul.msk.f32.vlgmr.msra.gmra.mxu1 %vm2086_vm15, %v354_v3  ;;  %v793_v5 = vsel %vm2086_vm15, %v354_v3, 0.0  ;;  %v359_v32 = vsub.f32 1.5, %v358_v36  ;;  %vm650_vm15 = vcmp.gt.s32.totalorder %v1867_v41, %v629_v60 }
  0xea   :  { %v1666_v6 = vpop.eup %1665  ;;  %v2104_v7 = vmax.f32 %v303_v1, 0.0  ;;  %vm960_vm1 = vcmp.gt.f32.partialorder %v793_v5, 0.0 }
  0xeb   :  { %v2108_v9 = vmax.f32 %v809_v4, 0.0  ;;  %vm1534_vm4 = vmpackc.low %vm960_vm1, %vm959_vm0  ;;  %v360_v10 = vmul.f32 %v1664_v35, %v359_v32  ;;  %v368_v11 = vmul.f32 %v1666_v6, %v2044_v38  ;;  %vm3202_vm0 = vcmp.eq.s32.totalorder %v1945_v59, %v1877_v44 }
  0xec   :  { %1667 = vrsqrt.f32 %v2104_v7  ;;  %1535 = vmatmul.msk.bf16.vlgmr.msra.gmra.mxu2 %vm1534_vm4, %v3129_v12  ;;  %vm2124_vm1 = vmand %vm3202_vm0, %vm1957_vm7  ;;  %vm362_vm4 = vcmp.eq.f32.partialorder %v1992_v13, inf  ;;  %v612_v32 = vadd.s32 48, %v1859_v37 }
  0xed   :  { %v255_v30 = vpop.f32.mrf.mxu0  ;;  %v361_v15 = vmul.f32 %v360_v10, %v1992_v13  ;;  %v369_v16 = vmul.f32 %v1666_v6, %v368_v11  ;;  %v2136_v22 = vsel %vm3205_vm12, %v2108_v9, 0.0  ;;  %vm2142_vm0 = vmand %vm650_vm15, %vm717_vm14  ;;  %vm3212_vm12 = vcmp.eq.s32.totalorder %v1986_v8, %v1877_v44 }
  0xee   :  { %v288_v19 = vmul.f32 2.0, %v255_v30  ;;  %v3207_v26 = vsel %vm2142_vm0, 4294967295, %v3206_v26  ;;  %vm374_vm14 = vcmp.eq.f32.partialorder %v2044_v38, inf  ;;  %v3215_v8 = vmov 0 }
  0xef   :  { %v363_v23 = vsel %vm362_vm4, %v1992_v13, %v361_v15  ;;  %v370_v59 = vmul.f32 0.5, %v369_v16  ;;  %3208 = vst [vmem:[#allocation11_spill] sm:$0xff] %v3207_v26  ;;  %vm2155_vm4 = vmxor %vm3111_vm5, %vm3193_vm11  ;;  %v3209_v13 = vmov 0  ;;  %v2167_v42 = vpop.permute.xlu2 %583  ;;  %vm376_vm5 = vcmp.eq.f32.partialorder %v2044_v38, 0.0 }
  0xf0   :  { %v304_v24 = vsub.f32 2.0, %v288_v19  ;;  %v2140_v25 = vsel %vm364_vm3, %v365_v21, %v363_v23  ;;  %v3210_v13 = vsel %vm2155_vm4, 4294967295, %v3209_v13  ;;  %vm3112_vm15 = vcmp.eq.s32.totalorder %v2167_v42, %v1877_v44  ;;  %vm2177_vm3 = vmand %vm3212_vm12, %vm1994_vm2 }
  0xf1   :  { %1504 = vmatmul.msk.f32.gmra.mxu1 %vm2124_vm1, %v2140_v25  ;;  %v371_v28 = vsub.f32 1.5, %v370_v59  ;;  %3211 = vst [vmem:[#allocation12_spill] sm:$0xff] %v3210_v13  ;;  %v794_v58 = vsel %vm2124_vm1, %v2140_v25, 0.0  ;;  %vm2192_vm12 = vmxor %vm3112_vm15, %vm3193_vm11  ;;  %v389_v16 = vand.u32 2147483648, %v2104_v7  ;;  %v630_v21 = vadd.s32 %v1863_v39, %v612_v32 }
  0xf2   :  { %v1668_v29 = vpop.eup %1667  ;;  %v2159_v33 = vmax.f32 %v304_v24, 0.0  ;;  %v3216_v8 = vsel %vm2192_vm12, 4294967295, %v3215_v8  ;;  %vm961_vm1 = vcmp.gt.f32.partialorder %v794_v58, 0.0 }
  0xf3   :  { %v372_v34 = vmul.f32 %v1666_v6, %v371_v28  ;;  %v380_v35 = vmul.f32 %v1668_v29, %v2104_v7 }
  0xf4   :  { %1669 = vrsqrt.f32 %v2159_v33  ;;  %vm400_vm12 = vcmp.eq.f32.partialorder %v2159_v33, 0.0 }
  0xf5   :  { %v258_v45 = vpop.f32.mrf.mxu0  ;;  %v373_v47 = vmul.f32 %v372_v34, %v2044_v38  ;;  %v381_v53 = vmul.f32 %v1668_v29, %v380_v35 }
  0xf6   :  { %v289_v54 = vmul.f32 2.0, %v258_v45 }
  0xf7   :  { %v375_v57 = vsel %vm374_vm14, %v2044_v38, %v373_v47  ;;  %v382_v60 = vmul.f32 0.5, %v381_v53 }
  0xf8   :  { %v305_v61 = vsub.f32 2.0, %v289_v54  ;;  %v2196_v62 = vsel %vm376_vm5, %v377_v56, %v375_v57  ;;  %vm3217_vm5 = vcmp.eq.s32.totalorder %v2036_v27, %v1877_v44  ;;  %v810_v27 = vsub.f32 1.0, %v2140_v25 }
  0xf9   :  { %1505 = vmatmul.msk.f32.gmra.mxu1 %vm2177_vm3, %v2196_v62  ;;  %v795_v38 = vsel %vm2177_vm3, %v2196_v62, 0.0  ;;  %v383_v36 = vsub.f32 1.5, %v382_v60  ;;  %vm2216_vm3 = vmand %vm3217_vm5, %vm2046_vm13  ;;  %v613_v54 = vadd.s32 56, %v1859_v37  ;;  %vm398_vm5 = vcmp.eq.f32.partialorder %v2159_v33, inf }
  0xfa   :  { %v1670_v1 = vpop.eup %1669  ;;  %v2204_v3 = vmax.f32 %v305_v61, 0.0  ;;  %vm962_vm14 = vcmp.gt.f32.partialorder %v795_v38, 0.0  ;;  %v2236_v35 = vmax.f32 %v810_v27, 0.0  ;;  %v401_v56 = vand.u32 2147483648, %v2159_v33 }
  0xfb   :  { %vm1536_vm15 = vmpackc.low %vm962_vm14, %vm961_vm1  ;;  %v384_v4 = vmul.f32 %v1668_v29, %v383_v36  ;;  %v392_v5 = vmul.f32 %v1670_v1, %v2159_v33  ;;  %vm386_vm1 = vcmp.eq.f32.partialorder %v2104_v7, inf  ;;  %vm667_vm14 = vcmp.lt.s32.totalorder %v630_v21, 8  ;;  %v2264_v36 = vpop.permute.xlu1 %559 }
  0xfc   :  { %1671 = vrsqrt.f32 %v2204_v3  ;;  %1537 = vmatmul.msk.bf16.gmra.mxu2 %vm1536_vm15, %v3129_v12  ;;  %vm388_vm15 = vcmp.eq.f32.partialorder %v2104_v7, 0.0  ;;  %vm718_vm6 = vmand %vm667_vm14, %vm3223_vm10  ;;  %vm3224_vm10 = vcmp.gt.s32.totalorder %v1867_v41, %v630_v21 }
  0xfd   :  { %v260_v6 = vpop.f32.mrf.mxu0  ;;  %v385_v10 = vmul.f32 %v384_v4, %v2104_v7  ;;  %v393_v11 = vmul.f32 %v1670_v1, %v392_v5  ;;  %v631_v5 = vadd.s32 %v1863_v39, %v613_v54 }
  0xfe   :  { %v290_v30 = vmul.f32 2.0, %v260_v6 }
  0xff   :  { %v387_v19 = vsel %vm386_vm1, %v2104_v7, %v385_v10  ;;  %v394_v20 = vmul.f32 0.5, %v393_v11  ;;  %vm3220_vm1 = vcmp.eq.s32.totalorder %v2117_v18, %v1877_v44  ;;  %v2254_v18 = vpop.permute.xlu0 %586  ;;  %v3227_v10 = vmov 0 }
 0x100   :  { %v306_v23 = vsub.f32 2.0, %v290_v30  ;;  %v2225_v59 = vsel %vm388_vm15, %v389_v16, %v387_v19  ;;  %vm2243_vm15 = vmand %vm3220_vm1, %vm2142_vm0  ;;  %vm3116_vm1 = vcmp.eq.s32.totalorder %v2254_v18, %v1877_v44  ;;  %v811_v30 = vsub.f32 1.0, %v2196_v62 }
 0x101   :  { %1506 = vmatmul.msk.f32.gmra.mxu1 %vm2216_vm3, %v2225_v59  ;;  %v395_v24 = vsub.f32 1.5, %v394_v20  ;;  %v796_v58 = vsel %vm2216_vm3, %v2225_v59, 0.0  ;;  %vm2274_vm3 = vmand %vm3224_vm10, %vm718_vm6  ;;  %vm3117_vm10 = vcmp.eq.s32.totalorder %v2264_v36, %v1877_v44  ;;  %v614_v19 = vadd.s32 64, %v1859_v37 }
 0x102   :  { %v1672_v28 = vpop.eup %1671  ;;  %v2231_v29 = vmax.f32 %v306_v23, 0.0  ;;  %vm3229_vm6 = vmand %vm1969_vm9, %vm1957_vm7  ;;  %v812_v54 = vsub.f32 1.0, %v2225_v59 }
 0x103   :  { %v396_v34 = vmul.f32 %v1670_v1, %v395_v24  ;;  %v404_v7 = vmul.f32 %v1672_v28, %v2204_v3  ;;  %v3225_v1 = vmov 0  ;;  %v2295_v11 = vsel %vm3229_vm6, %v2236_v35, 0.0 }
 0x104   :  { %1673 = vrsqrt.f32 %v2231_v29  ;;  %v3226_v1 = vsel %vm2274_vm3, 4294967295, %v3225_v1  ;;  %vm668_vm6 = vcmp.lt.s32.totalorder %v631_v5, 8  ;;  %v413_v24 = vand.u32 2147483648, %v2204_v3 }
 0x105   :  { %v263_v45 = vpop.f32.mrf.mxu0  ;;  %v397_v47 = vmul.f32 %v396_v34, %v2159_v33  ;;  %v405_v53 = vmul.f32 %v1672_v28, %v404_v7 }
 0x106   :  { %v291_v55 = vmul.f32 2.0, %v263_v45 }
 0x107   :  { %v399_v57 = vsel %vm398_vm5, %v2159_v33, %v397_v47  ;;  %v406_v60 = vmul.f32 0.5, %v405_v53  ;;  %vm2285_vm5 = vmxor %vm3116_vm1, %vm3193_vm11  ;;  %vm652_vm1 = vcmp.gt.s32.totalorder %v1867_v41, %v631_v5  ;;  %v2325_v47 = vpop.permute.xlu2 %562  ;;  %v632_v53 = vadd.s32 %v1863_v39, %v614_v19 }
 0x108   :  { %v307_v61 = vsub.f32 2.0, %v291_v55  ;;  %v2262_v38 = vsel %vm400_vm12, %v401_v56, %v399_v57  ;;  %vm963_vm12 = vcmp.gt.f32.partialorder %v796_v58, 0.0  ;;  %v3228_v10 = vsel %vm2285_vm5, 4294967295, %v3227_v10 }
 0x109   :  { %1507 = vmatmul.msk.f32.gmra.mxu1 %vm2243_vm15, %v2262_v38  ;;  %v797_v33 = vsel %vm2243_vm15, %v2262_v38, 0.0  ;;  %v407_v4 = vsub.f32 1.5, %v406_v60  ;;  %v3233_v57 = vmov 0 }
 0x10a   :  { %v1674_v32 = vpop.eup %1673  ;;  %v2279_v6 = vmax.f32 %v307_v61, 0.0  ;;  %vm964_vm14 = vcmp.gt.f32.partialorder %v797_v33, 0.0  ;;  %v615_v61 = vadd.s32 72, %v1859_v37  ;;  %v2351_v33 = vmax.f32 %v812_v54, 0.0 }
 0x10b   :  { %vm1538_vm15 = vmpackc.low %vm964_vm14, %vm963_vm12  ;;  %v408_v15 = vmul.f32 %v1672_v28, %v407_v4  ;;  %v416_v16 = vmul.f32 %v1674_v32, %v2231_v29  ;;  %vm410_vm14 = vcmp.eq.f32.partialorder %v2204_v3, inf  ;;  %v2316_v28 = vmax.f32 %v811_v30, 0.0 }
 0x10c   :  { %1675 = vrsqrt.f32 %v2279_v6  ;;  %1539 = vmatmul.msk.bf16.gmra.mxu2 %vm1538_vm15, %v3129_v12  ;;  %vm2310_vm12 = vmand %vm3117_vm10, %vm2274_vm3  ;;  %vm412_vm15 = vcmp.eq.f32.partialorder %v2204_v3, 0.0  ;;  %vm3232_vm10 = vcmp.lt.s32.totalorder %v1867_v41, 8 }
 0x10d   :  { %v265_v20 = vpop.f32.mrf.mxu0  ;;  %v409_v21 = vmul.f32 %v408_v15, %v2204_v3  ;;  %v417_v23 = vmul.f32 %v1674_v32, %v416_v16  ;;  %vm719_vm5 = vmand %vm668_vm6, %vm3232_vm10  ;;  %vm3121_vm10 = vcmp.eq.s32.totalorder %v2325_v47, %v1877_v44  ;;  %v425_v16 = vand.u32 2147483648, %v2231_v29 }
 0x10e   :  { %v292_v27 = vmul.f32 2.0, %v265_v20  ;;  %vm3235_vm6 = vmand %vm2006_vm8, %vm1994_vm2  ;;  %vm424_vm2 = vcmp.eq.f32.partialorder %v2231_v29, 0.0  ;;  %vm3238_vm8 = vcmp.lt.s32.totalorder %v1867_v41, 8 }
 0x10f   :  { %v411_v34 = vsel %vm410_vm14, %v2204_v3, %v409_v21  ;;  %v418_v7 = vmul.f32 0.5, %v417_v23  ;;  %vm2334_vm14 = vmand %vm652_vm1, %vm719_vm5  ;;  %v2347_v59 = vsel %vm3235_vm6, %v2316_v28, 0.0  ;;  %vm669_vm1 = vcmp.lt.s32.totalorder %v632_v53, 8 }
 0x110   :  { %v308_v45 = vsub.f32 2.0, %v292_v27  ;;  %v2320_v25 = vsel %vm412_vm15, %v413_v24, %v411_v34  ;;  %v3234_v57 = vsel %vm2334_vm14, 4294967295, %v3233_v57  ;;  %vm2359_vm5 = vmand %vm3121_vm10, %vm2334_vm14  ;;  %vm422_vm15 = vcmp.eq.f32.partialorder %v2231_v29, inf  ;;  %v2379_v34 = vpop.permute.xlu0 %565 }
 0x111   :  { %1508 = vmatmul.msk.f32.gmra.mxu1 %vm2310_vm12, %v2320_v25  ;;  %v419_v3 = vsub.f32 1.5, %v418_v7  ;;  %vm653_vm6 = vcmp.gt.s32.totalorder %v1867_v41, %v632_v53  ;;  %v798_v20 = vsel %vm2310_vm12, %v2320_v25, 0.0  ;;  %vm2373_vm10 = vmand %vm669_vm1, %vm3238_vm8  ;;  %v633_v7 = vadd.s32 %v1863_v39, %v615_v61 }
 0x112   :  { %v1676_v55 = vpop.eup %1675  ;;  %v2332_v56 = vmax.f32 %v308_v45, 0.0  ;;  %vm3241_vm8 = vnez %v3195_v49  ;;  %vm965_vm12 = vcmp.gt.f32.partialorder %v798_v20, 0.0  ;;  %vm3124_vm7 = vcmp.eq.s32.totalorder %v2379_v34, %v1877_v44 }
 0x113   :  { %v420_v58 = vmul.f32 %v1674_v32, %v419_v3  ;;  %v428_v60 = vmul.f32 %v1676_v55, %v2279_v6 }
 0x114   :  { %1677 = vrsqrt.f32 %v2332_v56 }
 0x115   :  { %v268_v4 = vpop.f32.mrf.mxu0  ;;  %v421_v5 = vmul.f32 %v420_v58, %v2231_v29  ;;  %v429_v32 = vmul.f32 %v1676_v55, %v428_v60 }
 0x116   :  { %v293_v30 = vmul.f32 2.0, %v268_v4  ;;  %v616_v4 = vadd.s32 80, %v1859_v37 }
 0x117   :  { %v423_v19 = vsel %vm422_vm15, %v2231_v29, %v421_v5  ;;  %v430_v23 = vmul.f32 0.5, %v429_v32  ;;  %v813_v29 = vsub.f32 1.0, %v2262_v38  ;;  %vm2401_vm15 = vmand %vm653_vm6, %vm2373_vm10  ;;  %v3243_v38 = vmov 0 }
 0x118   :  { %v309_v27 = vsub.f32 2.0, %v293_v30  ;;  %v2377_v24 = vsel %vm424_vm2, %v425_v16, %v423_v19  ;;  %vm3242_vm2 = vmand %vm3241_vm8, %vm2046_vm13  ;;  %v3244_v38 = vsel %vm2401_vm15, 4294967295, %v3243_v38  ;;  %vm434_vm6 = vcmp.eq.f32.partialorder %v2279_v6, inf }
 0x119   :  { %1509 = vmatmul.msk.f32.gmra.mxu1 %vm2359_vm5, %v2377_v24  ;;  %v799_v62 = vsel %vm2359_vm5, %v2377_v24, 0.0  ;;  %v431_v45 = vsub.f32 1.5, %v430_v23  ;;  %v844_v54 = vsel %vm3242_vm2, %v2351_v33, 0.0  ;;  %vm670_vm2 = vcmp.lt.s32.totalorder %v633_v7, 8  ;;  %vm2419_vm10 = vmand %vm3124_vm7, %vm2401_vm15 }
 0x11a   :  { %v1678_v3 = vpop.eup %1677  ;;  %v2395_v58 = vmax.f32 %v309_v27, 0.0  ;;  %vm966_vm1 = vcmp.gt.f32.partialorder %v799_v62, 0.0  ;;  %v2411_v5 = vmax.f32 %v813_v29, 0.0  ;;  %v437_v16 = vand.u32 2147483648, %v2279_v6  ;;  %v2432_v27 = vpop.permute.xlu1 %568 }
 0x11b   :  { %vm1540_vm5 = vmpackc.low %vm966_vm1, %vm965_vm12  ;;  %v432_v60 = vmul.f32 %v1676_v55, %v431_v45  ;;  %v440_v61 = vmul.f32 %v1678_v3, %v2332_v56  ;;  %vm436_vm12 = vcmp.eq.f32.partialorder %v2279_v6, 0.0  ;;  %vm654_vm1 = vcmp.gt.s32.totalorder %v1867_v41, %v633_v7 }
 0x11c   :  { %1679 = vrsqrt.f32 %v2395_v58  ;;  %1541 = vmatmul.msk.bf16.gmra.mxu2 %vm1540_vm5, %v3129_v12  ;;  %3245 = vst [vmem:[#allocation13_spill] sm:$0xff] %v2411_v5  ;;  %vm3248_vm5 = vcmp.lt.s32.totalorder %v1867_v41, 8  ;;  %v634_v29 = vadd.s32 %v1863_v39, %v616_v4  ;;  %vm1204_vm7 = vcmp.gt.f32.partialorder %v2136_v22, 0.0 }
 0x11d   :  { %v270_v53 = vpop.f32.mrf.mxu0  ;;  %v433_v32 = vmul.f32 %v432_v60, %v2279_v6  ;;  %v441_v30 = vmul.f32 %v1678_v3, %v440_v61  ;;  %vm721_vm13 = vmand %vm670_vm2, %vm3248_vm5  ;;  %v3250_v22 = vmov 0  ;;  %vm3128_vm9 = vcmp.eq.s32.totalorder %v2432_v27, %v1877_v44 }
 0x11e   :  { %v294_v15 = vmul.f32 2.0, %v270_v53  ;;  %vm3249_vm2 = vmand %vm2155_vm4, %vm2142_vm0  ;;  %v3252_v4 = vmov 0  ;;  %vm671_vm4 = vcmp.lt.s32.totalorder %v634_v29, 8 }
 0x11f   :  { %v435_v19 = vsel %vm434_vm6, %v2279_v6, %v433_v32  ;;  %v442_v20 = vmul.f32 0.5, %v441_v30  ;;  %vm1206_vm6 = vcmp.gt.f32.partialorder %v2347_v59, 0.0  ;;  %v845_v62 = vsel %vm3249_vm2, %v2411_v5, 0.0  ;;  %vm2451_vm5 = vmand %vm654_vm1, %vm721_vm13 }
 0x120   :  { %v310_v21 = vsub.f32 2.0, %v294_v15  ;;  %v2430_v23 = vsel %vm436_vm12, %v437_v16, %v435_v19  ;;  %vm1203_vm12 = vcmp.gt.f32.partialorder %v2077_v51, 0.0  ;;  %v3251_v22 = vsel %vm2451_vm5, 4294967295, %v3250_v22 }
 0x121   :  { %1510 = vmatmul.msk.f32.gmra.mxu1 %vm2419_vm10, %v2430_v23  ;;  %v443_v6 = vsub.f32 1.5, %v442_v20  ;;  %vm1208_vm8 = vcmp.gt.f32.partialorder %v845_v62, 0.0  ;;  %vm2458_vm0 = vmpackc.low %vm1204_vm7, %vm1203_vm12  ;;  %vm1205_vm2 = vcmp.gt.f32.partialorder %v2295_v11, 0.0  ;;  %v3254_v51 = vmov 0  ;;  %v2496_v62 = vpop.permute.xlu2 %571 }
 0x122   :  { %v1680_v45 = vpop.eup %1679  ;;  %v2447_v60 = vmax.f32 %v310_v21, 0.0  ;;  %v3253_v4 = vsel %vm2458_vm0, 4294967295, %v3252_v4  ;;  %vm2464_vm13 = vmpackc.low %vm1206_vm6, %vm1205_vm2  ;;  %vm1207_vm1 = vcmp.gt.f32.partialorder %v844_v54, 0.0  ;;  %v3256_v30 = vmov 0 }
 0x123   :  { %v444_v59 = vmul.f32 %v1678_v3, %v443_v6  ;;  %v452_v61 = vmul.f32 %v1680_v45, %v2395_v58  ;;  %v3255_v51 = vsel %vm2464_vm13, 4294967295, %v3254_v51  ;;  %v617_v3 = vadd.s32 88, %v1859_v37  ;;  %vm2470_vm7 = vmpackc.low %vm1208_vm8, %vm1207_vm1 }
 0x124   :  { %1681 = vrsqrt.f32 %v2447_v60  ;;  %v3257_v30 = vsel %vm2470_vm7, 4294967295, %v3256_v30  ;;  %vm2479_vm6 = vmand %vm3128_vm9, %vm2451_vm5  ;;  %vm446_vm12 = vcmp.eq.f32.partialorder %v2332_v56, inf  ;;  %v449_v54 = vand.u32 2147483648, %v2332_v56 }
 0x125   :  { %v273_v7 = vpop.f32.mrf.mxu0  ;;  %v445_v53 = vmul.f32 %v444_v59, %v2332_v56  ;;  %v453_v32 = vmul.f32 %v1680_v45, %v452_v61  ;;  %vm655_vm2 = vcmp.gt.s32.totalorder %v1867_v41, %v634_v29  ;;  %vm448_vm8 = vcmp.eq.f32.partialorder %v2332_v56, 0.0 }
 0x126   :  { %v295_v15 = vmul.f32 2.0, %v273_v7  ;;  %v800_v19 = vsel %vm2419_vm10, %v2430_v23, 0.0  ;;  %vm3260_vm1 = vcmp.lt.s32.totalorder %v1867_v41, 8  ;;  %v3261_v7 = vmov 0 }
 0x127   :  { %v447_v16 = vsel %vm446_vm12, %v2332_v56, %v445_v53  ;;  %vm722_vm9 = vmand %vm671_vm4, %vm3260_vm1  ;;  %v454_v20 = vmul.f32 0.5, %v453_v32  ;;  %vm967_vm10 = vcmp.gt.f32.partialorder %v800_v19, 0.0  ;;  %vm3131_vm1 = vcmp.eq.s32.totalorder %v2496_v62, %v1877_v44 }
 0x128   :  { %v311_v21 = vsub.f32 2.0, %v295_v15  ;;  %v2494_v6 = vsel %vm448_vm8, %v449_v54, %v447_v16  ;;  %vm2508_vm12 = vmand %vm655_vm2, %vm722_vm9  ;;  %v635_v53 = vadd.s32 %v1863_v39, %v617_v3  ;;  %v618_v11 = vadd.s32 96, %v1859_v37 }
 0x129   :  { %1511 = vmatmul.msk.f32.gmra.mxu1 %vm2479_vm6, %v2494_v6  ;;  %v801_v56 = vsel %vm2479_vm6, %v2494_v6, 0.0  ;;  %v455_v55 = vsub.f32 1.5, %v454_v20  ;;  %v3262_v7 = vsel %vm2508_vm12, 4294967295, %v3261_v7  ;;  %vm2525_vm9 = vmand %vm3131_vm1, %vm2508_vm12  ;;  %vm458_vm6 = vcmp.eq.f32.partialorder %v2395_v58, inf }
 0x12a   :  { %v1682_v59 = vpop.eup %1681  ;;  %v2504_v61 = vmax.f32 %v311_v21, 0.0  ;;  %vm968_vm4 = vcmp.gt.f32.partialorder %v801_v56, 0.0  ;;  %v461_v3 = vand.u32 2147483648, %v2395_v58  ;;  %vm672_vm2 = vcmp.lt.s32.totalorder %v635_v53, 8 }
 0x12b   :  { %vm1542_vm8 = vmpackc.low %vm968_vm4, %vm967_vm10  ;;  %v456_v32 = vmul.f32 %v1680_v45, %v455_v55  ;;  %v464_v15 = vmul.f32 %v1682_v59, %v2447_v60  ;;  %vm460_vm10 = vcmp.eq.f32.partialorder %v2395_v58, 0.0  ;;  %v636_v56 = vadd.s32 %v1863_v39, %v618_v11 }
 0x12c   :  { %1683 = vrsqrt.f32 %v2504_v61  ;;  %1543 = vmatmul.msk.bf16.gmra.mxu2 %vm1542_vm8, %v3129_v12  ;;  %vm656_vm4 = vcmp.gt.s32.totalorder %v1867_v41, %v635_v53  ;;  %vm3265_vm8 = vcmp.lt.s32.totalorder %v1867_v41, 8  ;;  %vm3268_vm13 = vcmp.lt.s32.totalorder %v1867_v41, 8 }
 0x12d   :  { %v275_v29 = vpop.f32.mrf.mxu0  ;;  %v457_v54 = vmul.f32 %v456_v32, %v2395_v58  ;;  %v465_v16 = vmul.f32 %v1682_v59, %v464_v15  ;;  %v3270_v45 = vmov 0 }
 0x12e   :  { %v296_v19 = vmul.f32 2.0, %v275_v29 }
 0x12f   :  { %v459_v20 = vsel %vm458_vm6, %v2395_v58, %v457_v54  ;;  %v466_v21 = vmul.f32 0.5, %v465_v16  ;;  %vm723_vm6 = vmand %vm672_vm2, %vm3265_vm8  ;;  %v2544_v58 = vpop.permute.xlu0 %574  ;;  %v619_v16 = vadd.s32 104, %v1859_v37  ;;  %vm470_vm8 = vcmp.eq.f32.partialorder %v2447_v60, inf }
 0x130   :  { %v312_v55 = vsub.f32 2.0, %v296_v19  ;;  %v2534_v32 = vsel %vm460_vm10, %v461_v3, %v459_v20  ;;  %vm673_vm10 = vcmp.lt.s32.totalorder %v636_v56, 8  ;;  %vm2549_vm1 = vmand %vm656_vm4, %vm723_vm6  ;;  %v3266_v19 = vmov 0 }
 0x131   :  { %1512 = vmatmul.msk.f32.gmra.mxu1 %vm2525_vm9, %v2534_v32  ;;  %v467_v15 = vsub.f32 1.5, %v466_v21  ;;  %v3267_v19 = vsel %vm2549_vm1, 4294967295, %v3266_v19  ;;  %vm3134_vm7 = vcmp.eq.s32.totalorder %v2544_v58, %v1877_v44  ;;  %v473_v21 = vand.u32 2147483648, %v2447_v60  ;;  %vm724_vm4 = vmand %vm673_vm10, %vm3268_vm13 }
 0x132   :  { %v1684_v29 = vpop.eup %1683  ;;  %v2539_v12 = vmax.f32 %v312_v55, 0.0  ;;  %vm472_vm6 = vcmp.eq.f32.partialorder %v2447_v60, 0.0  ;;  %vm755_vm2 = vmand %vm3134_vm7, %vm2549_vm1  ;;  %v637_v26 = vadd.s32 %v1863_v39, %v619_v16  ;;  %vm3269_vm13 = vcmp.gt.s32.totalorder %v1867_v41, %v636_v56 }
 0x133   :  { %v468_v54 = vmul.f32 %v1682_v59, %v467_v15  ;;  %v476_v11 = vmul.f32 %v1684_v29, %v2504_v61  ;;  %v802_v15 = vsel %vm2525_vm9, %v2534_v32, 0.0  ;;  %vm2578_vm9 = vmand %vm3269_vm13, %vm724_vm4  ;;  %v815_v16 = vsub.f32 1.0, %v2377_v24 }
 0x134   :  { %1685 = vrsqrt.f32 %v2539_v12  ;;  %v3271_v45 = vsel %vm2578_vm9, 4294967295, %v3270_v45  ;;  %vm969_vm10 = vcmp.gt.f32.partialorder %v802_v15, 0.0  ;;  %v3272_v56 = vmov 1.0|1.0  }
 0x135   :  { %v278_v53 = vpop.f32.mrf.mxu0  ;;  %v469_v3 = vmul.f32 %v468_v54, %v2447_v60  ;;  %v477_v20 = vmul.f32 %v1684_v29, %v476_v11  ;;  %vm3273_vm4 = vcmp.eq.s32.totalorder %v2325_v47, %v1877_v44  ;;  %v3274_v15 = vmov 0 }
 0x136   :  { %v297_v59 = vmul.f32 2.0, %v278_v53  ;;  %vm2595_vm13 = vmxor %vm3273_vm4, %vm3193_vm11 }
 0x137   :  { %v471_v55 = vsel %vm470_vm8, %v2447_v60, %v469_v3  ;;  %v478_v54 = vmul.f32 0.5, %v477_v20  ;;  %v3275_v15 = vsel %vm2595_vm13, 4294967295, %v3274_v15 }
 0x138   :  { %v313_v11 = vsub.f32 2.0, %v297_v59  ;;  %v2571_v53 = vsel %vm472_vm6, %v473_v21, %v471_v55  ;;  %vm3136_vm6 = vcmp.eq.s32.totalorder %v2039_v31, %v1877_v44  ;;  %v620_v55 = vadd.s32 112, %v1859_v37 }
 0x139   :  { %1513 = vmatmul.msk.f32.gmra.mxu1 %vm755_vm2, %v2571_v53  ;;  %v803_v60 = vsel %vm755_vm2, %v2571_v53, 0.0  ;;  %v479_v3 = vsub.f32 1.5, %v478_v54  ;;  %vm3144_vm2 = vmand %vm2595_vm13, %vm2334_vm14  ;;  %vm494_vm14 = vcmp.eq.f32.partialorder %v2539_v12, inf }
 0x13a   :  { %v1686_v13 = vpop.eup %1685  ;;  %v2582_v20 = vmax.f32 %v313_v11, 0.0  ;;  %vm970_vm8 = vcmp.gt.f32.partialorder %v803_v60, 0.0  ;;  %v814_v60 = vsub.f32 1.0, %v2320_v25 }
 0x13b   :  { %vm1544_vm7 = vmpackc.low %vm970_vm8, %vm969_vm10  ;;  %v480_v59 = vmul.f32 %v1684_v29, %v479_v3  ;;  %v488_v21 = vmul.f32 %v1686_v13, %v2539_v12  ;;  %vm482_vm10 = vcmp.eq.f32.partialorder %v2504_v61, inf  ;;  %v485_v3 = vand.u32 2147483648, %v2504_v61 }
 0x13c   :  { %1687 = vrsqrt.f32 %v2582_v20  ;;  %1545 = vmatmul.msk.bf16.gmra.mxu2 %vm1544_vm7, %v3272_v56  ;;  %vm2605_vm7 = vmand %vm3136_vm6, %vm2578_vm9  ;;  %vm3278_vm8 = vcmp.eq.s32.totalorder %v2264_v36, %v1877_v44  ;;  %vm484_vm6 = vcmp.eq.f32.partialorder %v2504_v61, 0.0  ;;  %v638_v36 = vadd.s32 %v1863_v39, %v620_v55 }
 0x13d   :  { %v280_v24 = vpop.f32.mrf.mxu0  ;;  %v481_v29 = vmul.f32 %v480_v59, %v2504_v61  ;;  %v489_v54 = vmul.f32 %v1686_v13, %v488_v21  ;;  %vm2616_vm4 = vmxor %vm3278_vm8, %vm3193_vm11  ;;  %v3279_v59 = vmov 0  ;;  %v2620_v21 = vmax.f32 %v815_v16, 0.0 }
 0x13e   :  { %v298_v47 = vmul.f32 2.0, %v280_v24  ;;  %v3280_v59 = vsel %vm2616_vm4, 4294967295, %v3279_v59  ;;  %vm3281_vm8 = vcmp.lt.s32.totalorder %v1867_v41, 8  ;;  %vm3282_vm9 = vcmp.lt.s32.totalorder %v637_v26, 8 }
 0x13f   :  { %v483_v5 = vsel %vm482_vm10, %v2504_v61, %v481_v29  ;;  %v490_v25 = vmul.f32 0.5, %v489_v54  ;;  %vm658_vm10 = vcmp.gt.s32.totalorder %v1867_v41, %v637_v26  ;;  %vm725_vm1 = vmand %vm3282_vm9, %vm3281_vm8  ;;  %v2638_v61 = vmax.f32 %v814_v60, 0.0 }
 0x140   :  { %v314_v24 = vsub.f32 2.0, %v298_v47  ;;  %v2628_v40 = vsel %vm484_vm6, %v485_v3, %v483_v5  ;;  %v847_v55 = vsel %vm3144_vm2, %v2620_v21, 0.0  ;;  %vm3150_vm9 = vcmp.eq.s32.totalorder %v2106_v63, %v1877_v44  ;;  %vm2656_vm8 = vmand %vm658_vm10, %vm725_vm1 }
 0x141   :  { %1514 = vmatmul.msk.f32.gmra.mxu1 %vm2605_vm7, %v2628_v40  ;;  %v491_v16 = vsub.f32 1.5, %v490_v25  ;;  %v3283_v54 = vmov 0  ;;  %v497_v3 = vand.u32 2147483648, %v2539_v12  ;;  %vm3285_vm2 = vmand %vm2616_vm4, %vm2274_vm3  ;;  %vm496_vm10 = vcmp.eq.f32.partialorder %v2539_v12, 0.0 }
 0x142   :  { %v1688_v49 = vpop.eup %1687  ;;  %v2640_v29 = vmax.f32 %v314_v24, 0.0  ;;  %v3284_v54 = vsel %vm2656_vm8, 4294967295, %v3283_v54  ;;  %v846_v25 = vsel %vm3285_vm2, %v2638_v61, 0.0  ;;  %vm757_vm6 = vmand %vm3150_vm9, %vm2656_vm8  ;;  %vm659_vm2 = vcmp.gt.s32.totalorder %v1867_v41, %v638_v36 }
 0x143   :  { %v492_v5 = vmul.f32 %v1686_v13, %v491_v16  ;;  %v500_v26 = vmul.f32 %v1688_v49, %v2582_v20  ;;  %v621_v13 = vadd.s32 120, %v1859_v37  ;;  %v804_v16 = vsel %vm2605_vm7, %v2628_v40, 0.0 }
 0x144   :  { %1689 = vrsqrt.f32 %v2640_v29  ;;  %vm3286_vm1 = vcmp.lt.s32.totalorder %v1867_v41, 8  ;;  %vm1209_vm7 = vcmp.gt.f32.partialorder %v846_v25, 0.0  ;;  %vm971_vm3 = vcmp.gt.f32.partialorder %v804_v16, 0.0 }
 0x145   :  { %v493_v60 = vmul.f32 %v492_v5, %v2539_v12  ;;  %v501_v47 = vmul.f32 %v1688_v49, %v500_v26  ;;  %vm3288_vm12 = vcmp.gt.f32.partialorder %v847_v55, 0.0  ;;  %v817_v37 = vsub.f32 1.0, %v2494_v6 }
 0x146   :  { %vm1588_vm0 = vmpackc.low %vm3288_vm12, %vm1209_vm7  ;;  %v816_v16 = vsub.f32 1.0, %v2430_v23 }
 0x147   :  { %v495_v24 = vsel %vm494_vm14, %v2539_v12, %v493_v60  ;;  %v502_v5 = vmul.f32 0.5, %v501_v47  ;;  %vm3287_vm14 = vcmp.lt.s32.totalorder %v638_v36, 8  ;;  %v639_v47 = vadd.s32 %v1863_v39, %v621_v13 }
 0x148   :  { %v2680_v26 = vsel %vm496_vm10, %v497_v3, %v495_v24  ;;  %vm726_vm13 = vmand %vm3287_vm14, %vm3286_vm1  ;;  %v3289_v36 = vmov 0  ;;  %v3292_v39 = vmov 0  ;;  %vm508_vm1 = vcmp.eq.f32.partialorder %v2582_v20, 0.0 }
 0x149   :  { %1515 = vmatmul.msk.f32.gmra.mxu1 %vm757_vm6, %v2680_v26  ;;  %v805_v12 = vsel %vm757_vm6, %v2680_v26, 0.0  ;;  %v503_v11 = vsub.f32 1.5, %v502_v5  ;;  %vm2691_vm9 = vmand %vm659_vm2, %vm726_vm13  ;;  %vm506_vm13 = vcmp.eq.f32.partialorder %v2582_v20, inf  ;;  %vm676_vm6 = vcmp.lt.s32.totalorder %v639_v47, 8 }
 0x14a   :  { %v1690_v60 = vpop.eup %1689  ;;  %vm972_vm4 = vcmp.gt.f32.partialorder %v805_v12, 0.0  ;;  %v3290_v36 = vsel %vm2691_vm9, 4294967295, %v3289_v36  ;;  %vm3297_vm2 = vcmp.eq.s32.totalorder %v2379_v34, %v1877_v44  ;;  %v2729_v5 = vmax.f32 %v817_v37, 0.0 }
 0x14b   :  { %vm1546_vm10 = vmpackc.low %vm972_vm4, %vm971_vm3  ;;  %v504_v3 = vmul.f32 %v1688_v49, %v503_v11  ;;  %v512_v24 = vmul.f32 %v1690_v60, %v2640_v29  ;;  %vm3291_vm3 = vcmp.eq.s32.totalorder %v2432_v27, %v1877_v44  ;;  %v509_v49 = vand.u32 2147483648, %v2582_v20 }
 0x14c   :  { %1547 = vmatmul.msk.bf16.vlgmr.msra.gmra.mxu3 %vm1546_vm10, %v3272_v56  ;;  %1589 = vmatmul.msk.bf16.vlgmr.msrb.gmra.mxu2 %vm1588_vm0, %v3272_v56  ;;  %vm2704_vm12 = vmxor %vm3291_vm3, %vm3193_vm11  ;;  %vm3294_vm0 = vcmp.eq.s32.totalorder %v2167_v42, %v1877_v44  ;;  %vm660_vm10 = vcmp.gt.s32.totalorder %v1867_v41, %v639_v47  ;;  %vm3300_vm3 = vcmp.lt.s32.totalorder %v1867_v41, 8  ;;  %v2743_v34 = vmax.f32 %v816_v16, 0.0 }
 0x14d   :  { %v505_v25 = vmul.f32 %v504_v3, %v2582_v20  ;;  %v513_v55 = vmul.f32 %v1690_v60, %v512_v24  ;;  %v3293_v39 = vsel %vm2704_vm12, 4294967295, %v3292_v39  ;;  %vm2715_vm4 = vmand %vm3294_vm0, %vm2691_vm9  ;;  %v3301_v11 = vmov 0 }
 0x14e   :  { %vm2725_vm14 = vmxor %vm3297_vm2, %vm3193_vm11  ;;  %v521_v47 = vand.u32 2147483648, %v2640_v29  ;;  %vm520_vm2 = vcmp.eq.f32.partialorder %v2640_v29, 0.0 }
 0x14f   :  { %v507_v23 = vsel %vm506_vm13, %v2582_v20, %v505_v25  ;;  %v514_v27 = vmul.f32 0.5, %v513_v55  ;;  %vm3153_vm7 = vmand %vm2704_vm12, %vm2451_vm5 }
 0x150   :  { %v2731_v42 = vsel %vm508_vm1, %v509_v49, %v507_v23  ;;  %vm727_vm13 = vmand %vm676_vm6, %vm3300_vm3  ;;  %v849_v12 = vsel %vm3153_vm7, %v2729_v5, 0.0  ;;  %vm518_vm6 = vcmp.eq.f32.partialorder %v2640_v29, inf  ;;  %vm3303_vm3 = vcmp.eq.s32.totalorder %v2254_v18, %v1877_v44 }
 0x151   :  { %1516 = vmatmul.msk.f32.gmra.mxu1 %vm2715_vm4, %v2731_v42  ;;  %v515_v20 = vsub.f32 1.5, %v514_v27  ;;  %vm3154_vm0 = vmand %vm2725_vm14, %vm2401_vm15  ;;  %v806_v24 = vsel %vm2715_vm4, %v2731_v42, 0.0  ;;  %v818_v18 = vsub.f32 1.0, %v2534_v32  ;;  %vm3304_vm4 = vcmp.eq.s32.totalorder %v2496_v62, %v1877_v44 }
 0x152   :  { %vm2755_vm1 = vmand %vm660_vm10, %vm727_vm13  ;;  %vm1212_vm10 = vcmp.gt.f32.partialorder %v849_v12, 0.0  ;;  %vm973_vm7 = vcmp.gt.f32.partialorder %v806_v24, 0.0  ;;  %vm3313_vm15 = vnez %v3179_v52  ;;  %v821_v27 = vsub.f32 1.0, %v2680_v26 }
 0x153   :  { %v516_v37 = vmul.f32 %v1690_v60, %v515_v20  ;;  %v3302_v11 = vsel %vm2755_vm1, 4294967295, %v3301_v11  ;;  %v848_v60 = vsel %vm3154_vm0, %v2743_v34, 0.0  ;;  %vm759_vm13 = vmand %vm3303_vm3, %vm2755_vm1  ;;  %v2811_v62 = vmax.f32 %v818_v18, 0.0 }
 0x154   :  { %vm3312_vm3 = vnez %v3267_v19  ;;  %v2849_v52 = vmax.f32 %v821_v27, 0.0  ;;  %v822_v18 = vsub.f32 1.0, %v2731_v42  ;;  %v3338_v27 = vld [vmem:[#allocation9_spill] sm:$0xff] }
 0x155   :  { %v517_v41 = vmul.f32 %v516_v37, %v2640_v29 }
 0x157   :  { %v519_v3 = vsel %vm518_vm6, %v2640_v29, %v517_v41  ;;  %vm1211_vm6 = vcmp.gt.f32.partialorder %v848_v60, 0.0  ;;  %v819_v29 = vsub.f32 1.0, %v2571_v53  ;;  %v820_v41 = vsub.f32 1.0, %v2628_v40 }
 0x158   :  { %v2778_v25 = vsel %vm520_vm2, %v521_v47, %v519_v3  ;;  %vm1590_vm5 = vmpackc.low %vm1212_vm10, %vm1211_vm6 }
 0x159   :  { %1517 = vmatmul.msk.f32.gmra.mxu1 %vm759_vm13, %v2778_v25  ;;  %v807_v55 = vsel %vm759_vm13, %v2778_v25, 0.0  ;;  %vm2790_vm2 = vmxor %vm3304_vm4, %vm3193_vm11  ;;  %v2802_v6 = vmax.f32 %v819_v29, 0.0  ;;  %vm3169_vm4 = vcmask 7168  }
 0x15a   :  { %vm974_vm0 = vcmp.gt.f32.partialorder %v807_v55, 0.0  ;;  %v823_v55 = vsub.f32 1.0, %v2778_v25  ;;  %v3336_v25 = vld [vmem:[#allocation10_spill] sm:$0xff] }
 0x15b   :  { %vm1548_vm12 = vmpackc.low %vm974_vm0, %vm973_vm7  ;;  %vm3307_vm7 = vcmp.eq.s32.totalorder %v2544_v58, %v1877_v44 }
 0x15c   :  { %1549 = vmatmul.msk.bf16.gmra.mxu3 %vm1548_vm12, %v3272_v56  ;;  %1591 = vmatmul.msk.bf16.gmra.mxu2 %vm1590_vm5, %v3272_v56  ;;  %vm2798_vm0 = vmxor %vm3307_vm7, %vm3193_vm11  ;;  %vm3310_vm5 = vnez %v3253_v4  ;;  %vm3311_vm12 = vnez %v3262_v7 }
 0x15d   :  { %vm3160_vm10 = vmand %vm2790_vm2, %vm3311_vm12 }
 0x15e   :  { %vm3158_vm13 = vmand %vm2798_vm0, %vm3312_vm3  ;;  %v850_v58 = vsel %vm3160_vm10, %v2811_v62, 0.0  ;;  %v873_v53 = vpop.f32.mrf.mxu0 }
 0x15f   :  { %v851_v4 = vsel %vm3158_vm13, %v2802_v6, 0.0  ;;  %vm1213_vm7 = vcmp.gt.f32.partialorder %v850_v58, 0.0  ;;  %vm3314_vm13 = vnez %v3177_v50  ;;  %v922_v20 = vsel %vm3169_vm4, %v873_v53, 0.0 }
 0x160   :  { %vm1214_vm6 = vcmp.gt.f32.partialorder %v851_v4, 0.0  ;;  %vm3315_vm3 = vmand %vm3313_vm15, %vm3314_vm13  ;;  %v3317_v50 = vmov 0  ;;  %vm3320_vm13 = vcmp.eq.s32.totalorder %v2039_v31, %v1877_v44 }
 0x161   :  { %1583 = vmatmul.msk.bf16.vlgmr.msrb.gmra.mxu1 %vm3310_vm5, %v3272_v56  ;;  %vm1592_vm5 = vmpackc.low %vm1214_vm6, %vm1213_vm7  ;;  %vm3316_vm6 = vcmp.eq.s32.totalorder %v2106_v63, %v1877_v44 }
 0x162   :  { %vm2845_vm15 = vmxor %vm3316_vm6, %vm3193_vm11  ;;  %vm3323_vm6 = vnez %v3173_v46 }
 0x163   :  { %v3318_v50 = vsel %vm2845_vm15, 4294967295, %v3317_v50  ;;  %vm2858_vm7 = vmxor %vm3320_vm13, %vm3193_vm11  ;;  %vm3326_vm11 = vnez %v3271_v45 }
 0x164   :  { %vm3164_vm13 = vmand %vm2858_vm7, %vm3326_vm11 }
 0x166   :  { %v876_v32 = vpop.f32.mrf.mxu1 }
 0x167   :  { %v923_v23 = vsel %vm3169_vm4, %v876_v32, 0.0 }
 0x168   :  { %v924_v37 = vadd.f32 %v923_v23, %v922_v20  ;;  %v2904_v23 = vmax.f32 %v823_v55, 0.0 }
 0x16c   :  { %1550 = vmatmul.msk.f32.vlgmr.msrb.gmra.mxu3 %vm3315_vm3, %v2054_v43  ;;  %1593 = vmatmul.msk.bf16.gmra.mxu2 %vm1592_vm5, %v3272_v56  ;;  %vm3319_vm3 = vnez %v3255_v51  ;;  %v2862_v43 = vmax.f32 %v820_v41, 0.0  ;;  %vm3161_vm5 = vmand %vm2845_vm15, %vm2656_vm8  ;;  %vm3328_vm8 = vnez %v3181_v0  ;;  %v2909_v0 = vmax.f32 %v822_v18, 0.0  ;;  %v3342_v41 = vld [vmem:[#allocation12_spill] sm:$0xff] }
 0x16d   :  { %v853_v44 = vsel %vm3161_vm5, %v2849_v52, 0.0  ;;  %vm3327_vm5 = vnez %v3183_v2 }
 0x16e   :  { %v879_v12 = vpop.f32.mrf.mxu1  ;;  %vm3329_vm15 = vmand %vm3327_vm5, %vm3328_vm8  ;;  %vm3330_vm8 = vnez %v3257_v30 }
 0x16f   :  { %v925_v47 = vsel %vm3169_vm4, %v879_v12, 0.0  ;;  %v1024_v60 = vpop.f32.mrf.mxu2  ;;  %v3341_v12 = vld [vmem:[#allocation13_spill] sm:$0xff] }
 0x170   :  { %v926_v3 = vadd.f32 %v925_v47, %v924_v37  ;;  %v3344_v47 = vld [vmem:[#allocation11_spill] sm:$0xff] }
 0x171   :  { %1585 = vmatmul.msk.bf16.gmra.mxu1 %vm3319_vm3, %v3272_v56  ;;  %vm3324_vm3 = vnez %v3175_v48  ;;  %v852_v48 = vsel %vm3164_vm13, %v2862_v43, 0.0 }
 0x172   :  { %vm3325_vm10 = vmand %vm3323_vm6, %vm3324_vm3  ;;  %vm1215_vm6 = vcmp.gt.f32.partialorder %v852_v48, 0.0 }
 0x174   :  { %1551 = vmatmul.msk.f32.gmra.mxu3 %vm3325_vm10, %v2108_v9  ;;  %v1064_v9 = vsel %vm3169_vm4, %v1024_v60, 0.0  ;;  %vm1216_vm10 = vcmp.gt.f32.partialorder %v853_v44, 0.0 }
 0x175   :  { %vm1594_vm3 = vmpackc.low %vm1216_vm10, %vm1215_vm6  ;;  %vm3332_vm10 = vnez %v3187_v17  ;;  %vm3333_vm6 = vnez %v3185_v14 }
 0x176   :  { %v882_v31 = vpop.f32.mrf.mxu1 }
 0x177   :  { %v927_v63 = vsel %vm3169_vm4, %v882_v31, 0.0  ;;  %v1026_v46 = vpop.f32.mrf.mxu2 }
 0x178   :  { %v928_v51 = vadd.f32 %v927_v63, %v926_v3  ;;  %v1065_v26 = vsel %vm3169_vm4, %v1026_v46, 0.0 }
 0x179   :  { %v1066_v24 = vadd.f32 %v1065_v26, %v1064_v9 }
 0x17c   :  { %1552 = vmatmul.msk.f32.gmra.mxu3 %vm3329_vm15, %v2236_v35  ;;  %1595 = vmatmul.msk.bf16.gmra.mxu2 %vm1594_vm3, %v3272_v56  ;;  %vm3331_vm15 = vnez %v3228_v10  ;;  %vm3334_vm3 = vmand %vm3332_vm10, %vm3333_vm6 }
 0x17d   :  { %vm3165_vm5 = vmand %vm3331_vm15, %vm2755_vm1  ;;  %vm3339_vm1 = vnez %v3338_v27 }
 0x17e   :  { %v885_v29 = vpop.f32.mrf.mxu1  ;;  %v855_v35 = vsel %vm3165_vm5, %v2904_v23, 0.0  ;;  %vm3337_vm5 = vnez %v3336_v25 }
 0x17f   :  { %v929_v4 = vsel %vm3169_vm4, %v885_v29, 0.0  ;;  %v1029_v32 = vpop.f32.mrf.mxu2  ;;  %vm1218_vm10 = vcmp.gt.f32.partialorder %v855_v35, 0.0  ;;  %vm3340_vm15 = vmand %vm3337_vm5, %vm3339_vm1  ;;  %vm3351_vm5 = vnez %v3234_v57 }
 0x180   :  { %v930_v58 = vadd.f32 %v929_v4, %v928_v51  ;;  %v1067_v53 = vsel %vm3169_vm4, %v1029_v32, 0.0 }
 0x181   :  { %v1068_v2 = vadd.f32 %v1067_v53, %v1066_v24  ;;  %1587 = vmatmul.msk.bf16.gmra.mxu1 %vm3330_vm8, %v3272_v56  ;;  %vm3335_vm8 = vnez %v3216_v8 }
 0x182   :  { %vm3168_vm13 = vmand %vm3335_vm8, %vm2691_vm9 }
 0x183   :  { %v854_v14 = vsel %vm3168_vm13, %v2909_v0, 0.0  ;;  %vm3343_vm13 = vnez %v3342_v41 }
 0x184   :  { %1553 = vmatmul.msk.f32.gmra.mxu3 %vm3334_vm3, %v2316_v28  ;;  %vm1217_vm6 = vcmp.gt.f32.partialorder %v854_v14, 0.0 }
 0x185   :  { %vm1596_vm3 = vmpackc.low %vm1218_vm10, %vm1217_vm6  ;;  %vm3347_vm10 = vnez %v3280_v59  ;;  %vm3348_vm6 = vnez %v3226_v1 }
 0x186   :  { %v888_v30 = vpop.f32.mrf.mxu1  ;;  %vm3349_vm1 = vmand %vm3347_vm10, %vm3348_vm6  ;;  %vm3356_vm10 = vnez %v3251_v22 }
 0x187   :  { %v1031_v42 = vpop.f32.mrf.mxu2 }
 0x188   :  { %v1069_v17 = vsel %vm3169_vm4, %v1031_v42, 0.0  ;;  %vm3345_vm4 = vnez %v3344_v47 }
 0x189   :  { %v1070_v28 = vadd.f32 %v1069_v17, %v1068_v2  ;;  %vm3346_vm9 = vmand %vm3343_vm13, %vm3345_vm4  ;;  %vm3355_vm13 = vnez %v3293_v39 }
 0x18a   :  { %vm3357_vm6 = vmand %vm3355_vm13, %vm3356_vm10 }
 0x18c   :  { %1554 = vmatmul.msk.f32.gmra.mxu3 %vm3340_vm15, %v2351_v33  ;;  %1597 = vmatmul.msk.bf16.gmra.mxu2 %vm1596_vm3, %v3272_v56  ;;  %vm3350_vm15 = vnez %v3275_v15 }
 0x18d   :  { %vm3352_vm3 = vmand %vm3350_vm15, %vm3351_vm5  ;;  %vm3361_vm5 = vnez %v3267_v19 }
 0x18e   :  { %v891_v20 = vpop.f32.mrf.mxu1 }
 0x18f   :  { %v1034_v37 = vpop.f32.mrf.mxu2 }
 0x194   :  { %1555 = vmatmul.msk.f32.gmra.mxu3 %vm3346_vm9, %v3341_v12  ;;  %vm3353_vm9 = vnez %v3244_v38 }
 0x195   :  { %vm3354_vm4 = vmand %vm2725_vm14, %vm3353_vm9  ;;  %vm3359_vm14 = vcmask 7168  }
 0x196   :  { %v894_v60 = vpop.f32.mrf.mxu1  ;;  %vm3360_vm15 = vmmov %vm3359_vm14 }
 0x197   :  { %v1036_v3 = vpop.f32.mrf.mxu2  ;;  %v933_v13 = vsel %vm3360_vm15, %v891_v20, 0.0  ;;  %vm3363_vm9 = vmmov %vm3359_vm14  ;;  %vm3375_vm15 = vnez %v3318_v50 }
 0x198   :  { %v935_v22 = vsel %vm3363_vm9, %v894_v60, 0.0 }
 0x19c   :  { %1556 = vmatmul.msk.f32.gmra.mxu3 %vm3349_vm1, %v2638_v61  ;;  %vm3358_vm1 = vmand %vm2790_vm2, %vm3311_vm12  ;;  %v931_v61 = vsel %vm3359_vm14, %v888_v30, 0.0 }
 0x19d   :  { %v932_v39 = vadd.f32 %v931_v61, %v930_v58  ;;  %vm3364_vm2 = vmmov %vm3363_vm9 }
 0x19e   :  { %v897_v33 = vpop.f32.mrf.mxu1  ;;  %vm3365_vm12 = vmmov %vm3364_vm2 }
 0x19f   :  { %v1039_v56 = vpop.f32.mrf.mxu2  ;;  %vm3368_vm13 = vmmov %vm3364_vm2 }
 0x1a0   :  { %vm3369_vm10 = vmmov %vm3364_vm2 }
 0x1a4   :  { %1557 = vmatmul.msk.f32.gmra.mxu3 %vm3352_vm3, %v2620_v21  ;;  %vm3362_vm3 = vmand %vm2798_vm0, %vm3361_vm5  ;;  %vm3376_vm5 = vnez %v3284_v54 }
 0x1a5   :  { %vm3367_vm0 = vmand %vm2858_vm7, %vm3326_vm11 }
 0x1a6   :  { %v900_v44 = vpop.f32.mrf.mxu1 }
 0x1a7   :  { %v1041_v31 = vpop.f32.mrf.mxu2  ;;  %v939_v63 = vsel %vm3365_vm12, %v900_v44, 0.0 }
 0x1ac   :  { %1558 = vmatmul.msk.f32.gmra.mxu3 %vm3354_vm4, %v2743_v34  ;;  %v937_v34 = vsel %vm3364_vm2, %v897_v33, 0.0  ;;  %vm3366_vm4 = vmmov %vm3364_vm2 }
 0x1ae   :  { %v903_v1 = vpop.f32.mrf.mxu1 }
 0x1af   :  { %v1044_v59 = vpop.f32.mrf.mxu2  ;;  %v941_v48 = vsel %vm3366_vm4, %v903_v1, 0.0 }
 0x1b4   :  { %1559 = vmatmul.msk.f32.gmra.mxu3 %vm3357_vm6, %v2729_v5  ;;  %v934_v5 = vadd.f32 %v933_v13, %v932_v39  ;;  %vm3370_vm6 = vmmov %vm3364_vm2 }
 0x1b5   :  { %v1071_v55 = vsel %vm3370_vm6, %v1034_v37, 0.0 }
 0x1b6   :  { %v906_v57 = vpop.f32.mrf.mxu1  ;;  %v1072_v45 = vadd.f32 %v1071_v55, %v1070_v28 }
 0x1b7   :  { %v1046_v15 = vpop.f32.mrf.mxu2  ;;  %v943_v19 = vsel %vm3368_vm13, %v906_v57, 0.0  ;;  %vm3383_vm13 = vnez %v3290_v36 }
 0x1bc   :  { %1560 = vmatmul.msk.f32.gmra.mxu3 %vm3358_vm1, %v2811_v62  ;;  %v936_v62 = vadd.f32 %v935_v22, %v934_v5  ;;  %vm3371_vm1 = vmmov %vm3364_vm2 }
 0x1bd   :  { %vm3372_vm14 = vmmov %vm3371_vm1 }
 0x1be   :  { %v909_v38 = vpop.f32.mrf.mxu1  ;;  %v938_v46 = vadd.f32 %v937_v34, %v936_v62  ;;  %v1073_v40 = vsel %vm3372_vm14, %v1036_v3, 0.0  ;;  %vm3373_vm7 = vmmov %vm3371_vm1 }
 0x1bf   :  { %v1049_v21 = vpop.f32.mrf.mxu2  ;;  %v945_v51 = vsel %vm3369_vm10, %v909_v38, 0.0  ;;  %vm3374_vm11 = vmmov %vm3371_vm1  ;;  %v1074_v53 = vadd.f32 %v1073_v40, %v1072_v45 }
 0x1c0   :  { %v940_v9 = vadd.f32 %v939_v63, %v938_v46  ;;  %v1075_v32 = vsel %vm3374_vm11, %v1039_v56, 0.0  ;;  %vm3378_vm9 = vmmov %vm3371_vm1  ;;  %vm3390_vm11 = vnez %v3302_v11 }
 0x1c1   :  { %v1077_v2 = vsel %vm3378_vm9, %v1041_v31, 0.0  ;;  %v1076_v42 = vadd.f32 %v1075_v32, %v1074_v53  ;;  %vm3379_vm2 = vmmov %vm3371_vm1 }
 0x1c2   :  { %v942_v49 = vadd.f32 %v941_v48, %v940_v9  ;;  %vm3380_vm12 = vmmov %vm3371_vm1 }
 0x1c3   :  { %v1079_v25 = vsel %vm3380_vm12, %v1044_v59, 0.0  ;;  %v1078_v20 = vadd.f32 %v1077_v2, %v1076_v42  ;;  %vm3381_vm4 = vmmov %vm3371_vm1 }
 0x1c4   :  { %1561 = vmatmul.msk.f32.gmra.mxu3 %vm3362_vm3, %v2802_v6  ;;  %v944_v29 = vadd.f32 %v943_v19, %v942_v49  ;;  %vm3377_vm3 = vmand %vm3375_vm15, %vm3376_vm5  ;;  %v1081_v50 = vsel %vm3381_vm4, %v1046_v15, 0.0 }
 0x1c5   :  { %v1080_v37 = vadd.f32 %v1079_v25, %v1078_v20  ;;  %vm3384_vm10 = vmand %vm3335_vm8, %vm3383_vm13  ;;  %vm3389_vm8 = vnez %v3228_v10 }
 0x1c6   :  { %v912_v7 = vpop.f32.mrf.mxu1  ;;  %v946_v4 = vadd.f32 %v945_v51, %v944_v29  ;;  %vm3391_vm15 = vmand %vm3389_vm8, %vm3390_vm11 }
 0x1c7   :  { %v1051_v16 = vpop.f32.mrf.mxu2  ;;  %v947_v18 = vsel %vm3371_vm1, %v912_v7, 0.0  ;;  %v1082_v41 = vadd.f32 %v1081_v50, %v1080_v37 }
 0x1c8   :  { %v948_v58 = vadd.f32 %v947_v18, %v946_v4 }
 0x1cc   :  { %1562 = vmatmul.msk.f32.gmra.mxu3 %vm3367_vm0, %v2862_v43  ;;  %vm3382_vm0 = vmmov %vm3371_vm1 }
 0x1cd   :  { %vm3385_vm6 = vmmov %vm3382_vm0 }
 0x1ce   :  { %v915_v6 = vpop.f32.mrf.mxu1  ;;  %v1085_v47 = vsel %vm3385_vm6, %v1051_v16, 0.0  ;;  %vm3386_vm1 = vmmov %vm3382_vm0 }
 0x1cf   :  { %v1054_v26 = vpop.f32.mrf.mxu3  ;;  %v3001_v24 = vpop.f32.mrf.mxu2  ;;  %v949_v43 = vsel %vm3373_vm7, %v915_v6, 0.0  ;;  %vm3387_vm14 = vmmov %vm3382_vm0 }
 0x1d0   :  { %v950_v35 = vadd.f32 %v949_v43, %v948_v58  ;;  %v1087_v31 = vsel %vm3386_vm1, %v1054_v26, 0.0  ;;  %vm3388_vm7 = vmmov %vm3382_vm0 }
 0x1d1   :  { %vm3392_vm5 = vmmov %vm3382_vm0 }
 0x1d2   :  { %vm3394_vm9 = vmmov %vm3382_vm0 }
 0x1d3   :  { %vm3396_vm12 = vmmov %vm3382_vm0 }
 0x1d4   :  { %1563 = vmatmul.msk.f32.gmra.mxu3 %vm3377_vm3, %v2849_v52  ;;  %v1083_v52 = vsel %vm3382_vm0, %v1049_v21, 0.0  ;;  %vm3393_vm3 = vmmov %vm3382_vm0 }
 0x1d5   :  { %v1084_v33 = vadd.f32 %v1083_v52, %v1082_v41  ;;  %vm3397_vm4 = vmmov %vm3382_vm0 }
 0x1d6   :  { %v918_v30 = vpop.f32.mrf.mxu1  ;;  %vm3398_vm13 = vmmov %vm3382_vm0 }
 0x1d7   :  { %v951_v14 = vsel %vm3379_vm2, %v918_v30, 0.0  ;;  %v1056_v17 = vpop.f32.mrf.mxu3  ;;  %v3016_v28 = vpop.f32.mrf.mxu2  ;;  %v1086_v59 = vadd.f32 %v1085_v47, %v1084_v33  ;;  %vm3395_vm2 = vmmov %vm3382_vm0 }
 0x1d8   :  { %v952_v27 = vadd.f32 %v951_v14, %v950_v35  ;;  %v1089_v57 = vsel %vm3387_vm14, %v1056_v17, 0.0  ;;  %vm3400_vm6 = vmmov %vm3382_vm0 }
 0x1d9   :  { %v1088_v8 = vadd.f32 %v1087_v31, %v1086_v59  ;;  %vm3401_vm1 = vmmov %vm3382_vm0 }
 0x1da   :  { %v953_v54 = vrot.slane %v952_v27, 4  ;;  %vm3402_vm14 = vmmov %vm3382_vm0 }
 0x1db   :  { %v1090_v38 = vadd.f32 %v1089_v57, %v1088_v8  ;;  %v1319_v50 = vsel %vm3402_vm14, %v3001_v24, 0.0  ;;  %vm3404_vm8 = vmmov %vm3382_vm0 }
 0x1dc   :  { %v954_v12 = vadd.f32 %v953_v54, %v952_v27  ;;  %1564 = vmatmul.msk.f32.gmra.mxu3 %vm3384_vm10, %v2909_v0  ;;  %vm3399_vm10 = vmmov %vm3382_vm0 }
 0x1dd   :  { %vm3405_vm11 = vmmov %vm3382_vm0 }
 0x1de   :  { %v955_v60 = vrot.slane %v954_v12, 2  ;;  %v1268_v3 = vpop.f32.mrf.mxu1  ;;  %vm3417_vm14 = vmmov %vm3382_vm0 }
 0x1df   :  { %v1059_v56 = vpop.f32.mrf.mxu3  ;;  %v1288_v44 = vpop.f32.mrf.mxu2  ;;  %v1308_v29 = vsel %vm3396_vm12, %v1268_v3, 0.0  ;;  %vm3411_vm12 = vmmov %vm3382_vm0 }
 0x1e0   :  { %v956_v1 = vadd.f32 %v955_v60, %v954_v12  ;;  %v1091_v36 = vsel %vm3388_vm7, %v1059_v56, 0.0  ;;  %vm3403_vm7 = vmmov %vm3382_vm0  ;;  %v1323_v41 = vsel %vm3404_vm8, %v1288_v44, 0.0 }
 0x1e1   :  { %v1092_v61 = vadd.f32 %v1091_v36, %v1090_v38  ;;  %v1321_v52 = vsel %vm3403_vm7, %v3016_v28, 0.0  ;;  %vm3418_vm7 = vmmov %vm3382_vm0 }
 0x1e2   :  { %v957_v15 = vrot.slane %v956_v1, 1  ;;  %vm3419_vm8 = vmmov %vm3382_vm0 }
 0x1e4   :  { %1565 = vmatmul.msk.f32.gmra.mxu3 %vm3391_vm15, %v2904_v23  ;;  %v958_v0 = vadd.f32 %v957_v15, %v956_v1  ;;  %vm3406_vm15 = vmmov %vm3382_vm0 }
 0x1e6   :  { %v1270_v21 = vpop.f32.mrf.mxu1  ;;  %1348 = vperm.xlu1 %1656, %v958_v0  }
 0x1e7   :  { %v1061_v13 = vpop.f32.mrf.mxu3  ;;  %v1290_v39 = vpop.f32.mrf.mxu2  ;;  %v1309_v26 = vsel %vm3395_vm2, %v1270_v21, 0.0  ;;  %vm3410_vm2 = vmmov %vm3382_vm0 }
 0x1e8   :  { %v1093_v22 = vsel %vm3392_vm5, %v1061_v13, 0.0  ;;  %v1310_v45 = vadd.f32 %v1309_v26, %v1308_v29  ;;  %v1325_v60 = vsel %vm3405_vm11, %v1290_v39, 0.0  ;;  %vm3407_vm5 = vmmov %vm3382_vm0 }
 0x1e9   :  { %v1094_v5 = vadd.f32 %v1093_v22, %v1092_v61  ;;  %vm3420_vm11 = vmmov %vm3382_vm0 }
 0x1eb   :  { %v1095_v7 = vrot.slane %v1094_v5, 4 }
 0x1ed   :  { %v1096_v34 = vadd.f32 %v1095_v7, %v1094_v5 }
 0x1ee   :  { %v1273_v16 = vpop.f32.mrf.mxu1 }
 0x1ef   :  { %v1097_v62 = vrot.slane %v1096_v34, 2  ;;  %v1118_v63 = vpop.f32.mrf.mxu3  ;;  %v1293_v10 = vpop.f32.mrf.mxu2  ;;  %v1311_v18 = vsel %vm3397_vm4, %v1273_v16, 0.0  ;;  %vm3412_vm4 = vmmov %vm3382_vm0 }
 0x1f0   :  { %v1166_v49 = vsel %vm3393_vm3, %v1118_v63, 0.0  ;;  %v1312_v53 = vadd.f32 %v1311_v18, %v1310_v45  ;;  %v1327_v1 = vsel %vm3407_vm5, %v1293_v10, 0.0  ;;  %vm3408_vm3 = vmmov %vm3382_vm0 }
 0x1f1   :  { %v1098_v46 = vadd.f32 %v1097_v62, %v1096_v34  ;;  %vm3422_vm5 = vmmov %vm3382_vm0 }
 0x1f3   :  { %v1099_v11 = vrot.slane %v1098_v46, 1 }
 0x1f5   :  { %v1100_v48 = vadd.f32 %v1099_v11, %v1098_v46 }
 0x1f6   :  { %v1275_v23 = vpop.f32.mrf.mxu1 }
 0x1f7   :  { %v1121_v9 = vpop.f32.mrf.mxu3  ;;  %v1295_v19 = vpop.f32.mrf.mxu2  ;;  %1355 = vperm.xlu2 %1657, %v1100_v48   ;;  %v1313_v32 = vsel %vm3398_vm13, %v1275_v23, 0.0  ;;  %vm3413_vm13 = vmmov %vm3382_vm0 }
 0x1f8   :  { %v1167_v6 = vsel %vm3394_vm9, %v1121_v9, 0.0  ;;  %v1314_v35 = vadd.f32 %v1313_v32, %v1312_v53  ;;  %v1329_v57 = vsel %vm3408_vm3, %v1295_v19, 0.0  ;;  %vm3409_vm9 = vmmov %vm3382_vm0 }
 0x1f9   :  { %v1168_v51 = vadd.f32 %v1167_v6, %v1166_v49 }
 0x1fe   :  { %v1278_v55 = vpop.f32.mrf.mxu1 }
 0x1ff   :  { %v1124_v40 = vpop.f32.mrf.mxu3  ;;  %v1298_v4 = vpop.f32.mrf.mxu2  ;;  %v1315_v2 = vsel %vm3399_vm10, %v1278_v55, 0.0  ;;  %vm3414_vm10 = vmmov %vm3382_vm0 }
 0x200   :  { %v1169_v43 = vsel %vm3382_vm0, %v1124_v40, 0.0  ;;  %v1316_v30 = vadd.f32 %v1315_v2, %v1314_v35  ;;  %v1331_v28 = vsel %vm3409_vm9, %v1298_v4, 0.0 }
 0x201   :  { %v1170_v58 = vadd.f32 %v1169_v43, %v1168_v51 }
 0x206   :  { %v1280_v42 = vpop.f32.mrf.mxu1 }
 0x207   :  { %v1317_v14 = vsel %vm3400_vm6, %v1280_v42, 0.0  ;;  %v1127_v17 = vpop.f32.mrf.mxu3  ;;  %v1300_v25 = vpop.f32.mrf.mxu2  ;;  %vm3415_vm6 = vmmov %vm3382_vm0 }
 0x208   :  { %v1318_v27 = vadd.f32 %v1317_v14, %v1316_v30  ;;  %v1171_v20 = vsel %vm3401_vm1, %v1127_v17, 0.0  ;;  %v1333_v44 = vsel %vm3410_vm2, %v1300_v25, 0.0  ;;  %vm3416_vm1 = vmmov %vm3382_vm0 }
 0x209   :  { %v1172_v54 = vadd.f32 %v1171_v20, %v1170_v58 }
 0x20a   :  { %v1320_v37 = vadd.f32 %v1319_v50, %v1318_v27 }
 0x20c   :  { %v1322_v12 = vadd.f32 %v1321_v52, %v1320_v37 }
 0x20e   :  { %v1324_v47 = vadd.f32 %v1323_v41, %v1322_v12 }
 0x20f   :  { %v1130_v3 = vpop.f32.mrf.mxu3  ;;  %v1303_v33 = vpop.f32.mrf.mxu2 }
 0x210   :  { %v1326_v56 = vadd.f32 %v1325_v60, %v1324_v47  ;;  %v1173_v31 = vsel %vm3406_vm15, %v1130_v3, 0.0  ;;  %v1335_v21 = vsel %vm3411_vm12, %v1303_v33, 0.0  ;;  %vm3421_vm15 = vmmov %vm3382_vm0  ;;  %v3423_v3 = vld [vmem:[#allocation8_spill] sm:$0xff] }
 0x211   :  { %v1174_v59 = vadd.f32 %v1173_v31, %v1172_v54  ;;  %vm1345_vm3 = vcmp.eq.s32.totalorder %v3423_v3, 0  ;;  %vm1352_vm9 = vcmp.eq.s32.totalorder %v3423_v3, 1  ;;  %vm1360_vm2 = vcmp.eq.s32.totalorder %v3423_v3, 2 }
 0x212   :  { %v1328_v24 = vadd.f32 %v1327_v1, %v1326_v56  ;;  %vm1368_vm12 = vcmp.eq.s32.totalorder %v3423_v3, 3 }
 0x214   :  { %v1330_v15 = vadd.f32 %v1329_v57, %v1328_v24 }
 0x216   :  { %v1332_v8 = vadd.f32 %v1331_v28, %v1330_v15 }
 0x217   :  { %v1133_v36 = vpop.f32.mrf.mxu3  ;;  %v1305_v38 = vpop.f32.mrf.mxu2 }
 0x218   :  { %v1334_v0 = vadd.f32 %v1333_v44, %v1332_v8  ;;  %v1337_v13 = vsel %vm3412_vm4, %v1305_v38, 0.0  ;;  %v1175_v19 = vsel %vm3382_vm0, %v1133_v36, 0.0 }
 0x219   :  { %v1176_v6 = vadd.f32 %v1175_v19, %v1174_v59 }
 0x21a   :  { %v1336_v61 = vadd.f32 %v1335_v21, %v1334_v0 }
 0x21c   :  { %v1338_v39 = vadd.f32 %v1337_v13, %v1336_v61 }
 0x21e   :  { %v1339_v22 = vrot.slane %v1338_v39, 4 }
 0x21f   :  { %v1136_v5 = vpop.f32.mrf.mxu3 }
 0x220   :  { %v1340_v7 = vadd.f32 %v1339_v22, %v1338_v39  ;;  %v1177_v49 = vsel %vm3413_vm13, %v1136_v5, 0.0 }
 0x221   :  { %v1178_v26 = vadd.f32 %v1177_v49, %v1176_v6 }
 0x222   :  { %v1341_v34 = vrot.slane %v1340_v7, 2 }
 0x224   :  { %v1342_v16 = vadd.f32 %v1341_v34, %v1340_v7 }
 0x226   :  { %v1343_v62 = vrot.slane %v1342_v16, 1 }
 0x227   :  { %v1139_v63 = vpop.f32.mrf.mxu3 }
 0x228   :  { %v1344_v10 = vadd.f32 %v1343_v62, %v1342_v16  ;;  %v1179_v51 = vsel %vm3414_vm10, %v1139_v63, 0.0 }
 0x229   :  { %v1180_v18 = vadd.f32 %v1179_v51, %v1178_v26 }
 0x22a   :  { %1371 = vperm.xlu1 %1656, %v1344_v10  }
 0x22f   :  { %v1142_v46 = vpop.f32.mrf.mxu3 }
 0x230   :  { %v1181_v29 = vsel %vm3415_vm6, %v1142_v46, 0.0 }
 0x231   :  { %v1182_v4 = vadd.f32 %v1181_v29, %v1180_v18 }
 0x237   :  { %v1145_v11 = vpop.f32.mrf.mxu3 }
 0x238   :  { %v1183_v40 = vsel %vm3416_vm1, %v1145_v11, 0.0 }
 0x239   :  { %v1184_v43 = vadd.f32 %v1183_v40, %v1182_v4 }
 0x23f   :  { %v1148_v48 = vpop.f32.mrf.mxu3 }
 0x240   :  { %v1185_v45 = vsel %vm3417_vm14, %v1148_v48, 0.0 }
 0x241   :  { %v1186_v58 = vadd.f32 %v1185_v45, %v1184_v43 }
 0x247   :  { %v1151_v23 = vpop.f32.mrf.mxu3 }
 0x248   :  { %v1187_v32 = vsel %vm3418_vm7, %v1151_v23, 0.0 }
 0x249   :  { %v1188_v35 = vadd.f32 %v1187_v32, %v1186_v58 }
 0x24f   :  { %v1154_v9 = vpop.f32.mrf.mxu3 }
 0x250   :  { %v1189_v2 = vsel %vm3419_vm8, %v1154_v9, 0.0 }
 0x251   :  { %v1190_v42 = vadd.f32 %v1189_v2, %v1188_v35  ;;  %v1356_v33 = vpop.permute.xlu2 %1355 }
 0x252   :  { %v1358_v31 = vsel %vm1352_vm9, %v1356_v33, 0.0 }
 0x257   :  { %v1157_v55 = vpop.f32.mrf.mxu3 }
 0x258   :  { %v1191_v30 = vsel %vm3420_vm11, %v1157_v55, 0.0  ;;  %v1349_v60 = vpop.permute.xlu1 %1348 }
 0x259   :  { %v1192_v17 = vadd.f32 %v1191_v30, %v1190_v42  ;;  %v1351_v56 = vsel %vm1345_vm3, %v1349_v60, 0.0 }
 0x25a   :  { %v1359_v1 = vadd.f32 %v1358_v31, %v1351_v56 }
 0x25f   :  { %v1160_v53 = vpop.f32.mrf.mxu3 }
 0x260   :  { %v1193_v14 = vsel %vm3421_vm15, %v1160_v53, 0.0 }
 0x261   :  { %v1194_v25 = vadd.f32 %v1193_v14, %v1192_v17 }
 0x267   :  { %v1163_v27 = vpop.f32.mrf.mxu3 }
 0x268   :  { %v1195_v20 = vsel %vm3422_vm5, %v1163_v27, 0.0 }
 0x269   :  { %v1196_v50 = vadd.f32 %v1195_v20, %v1194_v25 }
 0x26b   :  { %v1197_v54 = vrot.slane %v1196_v50, 4 }
 0x26d   :  { %v1198_v37 = vadd.f32 %v1197_v54, %v1196_v50 }
 0x26f   :  { %v1199_v52 = vrot.slane %v1198_v37, 2 }
 0x271   :  { %v1200_v12 = vadd.f32 %v1199_v52, %v1198_v37 }
 0x273   :  { %v1201_v41 = vrot.slane %v1200_v12, 1 }
 0x275   :  { %v1202_v47 = vadd.f32 %v1201_v41, %v1200_v12 }
 0x277   :  { %1363 = vperm.xlu0 %1655, %v1202_v47  }
 0x29c   :  { %v1372_v59 = vpop.permute.xlu1 %1371 }
 0x29d   :  { %v1374_v28 = vsel %vm1368_vm12, %v1372_v59, 0.0 }
 0x2e9   :  { %v1364_v24 = vpop.permute.xlu0 %1363  ;;  %1379 = sbr.rel (%p1598_p3) target bundleno = 752 (0x2f0), region = 21 }
 0x2ea   :  { %v1366_v57 = vsel %vm1360_vm2, %v1364_v24, 0.0 }
 0x2eb   :  { %v1367_v15 = vadd.f32 %v1366_v57, %v1359_v1 }
 0x2ed   :  { %v1375_v8 = vadd.f32 %v1374_v28, %v1367_v15 }
 0x2ef   :  { %1380 = vst [vmem:[#allocation5] sm:$0xff] %v1375_v8 }
 0x2f0 PF:  { %p1599_p4 = scmp.eq.s32.totalorder %s1767_s0, %s3094_s1 }
 0x2f2   :  { %1384 = sbr.rel (%p1599_p4) target bundleno = 763 (0x2fb), region = 25 }
 0x2f7   :  { %v1385_v44 = vld [vmem:[#allocation5] sm:$0xff] }
 0x2f8   :  { %v1386_v36 = vadd.f32 %v1385_v44, %v1375_v8 }
 0x2fa   :  { %1387 = vst [vmem:[#allocation5] sm:$0xff] %v1386_v36 }
 0x2fb PF:  { %s1390_s29 = sld [smem:[#allocation3]]  ;;  %s1722_s30 = smov [#allocation5]  }
 0x2fc   :  { %s1396_s7 = sshll.u32 %s1722_s30, 4  ;;  %s1707_s4 = scalar_lea.hbm %s3099_s6, 8  ;;  %s1397_s7 = int_to_ptr.vmem [resolvable:$true] %s1396_s7 }
 0x301   :  { %s1600_s3 = sshll.u32 %s1390_s29, 3 }
 0x302   :  { %s1394_s10 = scalar_lea.hbm %s3099_s6, %s1600_s3 }
 0x303   :  { %s1398_s11 = sshll.u32 %s1394_s10, 4  ;;  %s1399_s11 = int_to_ptr.hbm [resolvable:$true] %s1398_s11 }
 0x304   :  { %s1703_s12 = sshra.s32 %s1399_s11, 4  ;;  %s1704_s12 = int_to_ptr.hbm [resolvable:$true] %s1703_s12 }
 0x305   :  { %s1705_s13 = scalar_lea.hbm %s1704_s12, 8  ;;  %p1708_p6 = scmp.lt.s32.totalorder %s1704_s12, %s3099_s6 }
 0x306   :  { %p1706_p5 = scmp.ne.s32.totalorder %s1704_s12, %s1705_s13  ;;  %p1709_p7 = scmp.lt.s32.totalorder %s1707_s4, %s1705_s13 }
 0x308   :  { %p1710_p8 = por %p1709_p7, %p1708_p6 }
 0x30a   :  { %p1711_p9 = pnand %p1710_p8, %p1706_p5 }
 0x30c   :  { %1714 = shalt.err (!%p1711_p9)
}
 0x30d   :  { %1401 = dma.vmem_to_hbm [thread:$0]  %s1397_s7, 128, %s1399_s11, [#allocation6]  }
 0x30e   :  { %1715 = dma.done.wait [#allocation6], 128  }
 0x30f   :  { %1716 = vsyncadd [#allocation6], 4294967168 }
 0x310   :  { %1406 = vsyncpa [#allocation6], 1 }

</bundles_post_ra>
